<compile_context>
chip_gen: v6e
topology: v6e:2x2x1
jax: 0.10.0
libtpu: 0.0.40
codegen_flags: <defaults>
</compile_context>

<pallas_src>
import functools
import math

import jax
import jax.numpy as jnp
import numpy as np
from jax.experimental import pallas as pl
from jax.experimental.pallas import tpu as pltpu

POOL_K = 5       # AvgPool2d kernel size (fixed by the module)
C_MID = 128      # Conv1x1 output channels
C_OUT = 768      # Conv2x2 output channels
LANE = 128
VMEM_BUDGET = 24 * 1024 * 1024   # conservative: under v7x's 32 MiB scoped default


def _round_up(x, m):
    return (x + m - 1) // m * m


def _aux_head_kernel(x_ref, w1_ref, b1_ref, w2_ref, b2_ref, wfc_ref, bfc_ref, o_ref,
                     *, tile_n, n_taps):
    """x_ref: (n_taps*tile_n, kdim_pad) tap-major im2col rows of the raw input.

    w1_ref : (kdim_pad, 128)    1x1-conv weight tiled over the 5x5 window,
                                (1/25) pooling factor and BN1 scale folded in
    b1_ref : (1, 128)           BN1 shift
    w2_ref : (n_taps*128, 768)  2x2-conv taps stacked along K, BN2 scale folded in
    b2_ref : (1, 768)           BN2 shift
    wfc_ref: (768, NC_pad)      FC weight, lane-padded
    bfc_ref: (1, NC_pad)        FC bias, lane-padded
    """
    cdt = w1_ref.dtype                         # MXU compute dtype (bf16 or f32)

    # Leading ReLU in the compute dtype (max-with-0 is exact in bf16) — no f32
    # up/down cast over the largest tensor in the kernel.
    x = jnp.maximum(x_ref[...], 0.0)                                    # (4*TN, Kp)

    # --- avg-pool + 1x1 conv + BN1 scale as ONE matmul, taps stacked along M ----
    h = jnp.dot(x, w1_ref[...], preferred_element_type=jnp.float32)    # (4*TN, 128)
    h = jnp.maximum(h + b1_ref[...], 0.0).astype(cdt)                  # BN1 shift+ReLU

    # --- 2x2 conv + BN2: four accumulating dots on tap-aligned slices ----------
    # tile_n is a multiple of 16 -> row slices are sublane-aligned views, and the
    # w2 K-slices are 128-row aligned: no relayout, f32 accumulation.
    y = jnp.dot(h[0:tile_n, :], w2_ref[0:C_MID, :],
                preferred_element_type=jnp.float32)                    # (TN, 768)
    for t in range(1, n_taps):
        y += jnp.dot(h[t * tile_n:(t + 1) * tile_n, :],
                     w2_ref[t * C_MID:(t + 1) * C_MID, :],
                     preferred_element_type=jnp.float32)
    y = jnp.maximum(y + b2_ref[...], 0.0).astype(cdt)                  # BN2 shift+ReLU

    # --- classifier (output lane-padded to a multiple of 128 -> dense vst) ------
    logits = jnp.dot(y, wfc_ref[...], preferred_element_type=jnp.float32) + bfc_ref[...]
    o_ref[...] = logits.astype(o_ref.dtype)


def fold_params(p, *, kdim_pad, eps=1e-5, compute_dtype=jnp.bfloat16):
    """Fold eval-mode BN + pooling factor into the three matmul weights."""
    num_classes = p["fc_w"].shape[0]
    nc_pad = _round_up(num_classes, LANE)
    c = p["conv1_w"].shape[1]
    kdim = POOL_K * POOL_K * c
    inv_area = 1.0 / float(POOL_K * POOL_K)

    sc1 = p["bn1_gamma"] / jnp.sqrt(p["bn1_var"] + eps)
    sh1 = p["bn1_beta"] - p["bn1_mean"] * sc1
    w1 = jnp.transpose(p["conv1_w"][:, :, 0, 0], (1, 0))                  # (C, 128)
    # im2col feature order within a tap is (c, kh, kw): repeat each channel row 25x.
    w1_eff = jnp.repeat(w1 * inv_area * sc1[None, :], POOL_K * POOL_K, axis=0)
    w1_pad = jnp.zeros((kdim_pad, C_MID), jnp.float32).at[:kdim, :].set(w1_eff)
    b1 = sh1.reshape(1, C_MID)

    sc2 = p["bn2_gamma"] / jnp.sqrt(p["bn2_var"] + eps)
    sh2 = p["bn2_beta"] - p["bn2_mean"] * sc2
    # (768,128,2,2) -> (kh,kw,128,768) -> (4*128, 768); row t*128+k with t = kh*2+kw.
    w2 = jnp.transpose(p["conv2_w"], (2, 3, 1, 0)).reshape(4 * C_MID, C_OUT)
    w2_eff = w2 * sc2[None, :]
    b2 = sh2.reshape(1, C_OUT)

    wfc = jnp.transpose(p["fc_w"], (1, 0))                                 # (768, nc)
    wfc_pad = jnp.zeros((C_OUT, nc_pad), jnp.float32).at[:, :num_classes].set(wfc)
    bfc_pad = jnp.zeros((1, nc_pad), jnp.float32).at[:, :num_classes].set(
        p["fc_b"][None, :])

    cdt = jnp.dtype(compute_dtype)
    return (w1_pad.astype(cdt), b1.astype(jnp.float32),
            w2_eff.astype(cdt), b2.astype(jnp.float32),
            wfc_pad.astype(cdt), bfc_pad.astype(jnp.float32))


def _choose_tile_n(n, max_tile, kdim_pad, nc_pad, in_itemsize):
    """Pick the batch tile: big (MXU-filling), balanced, >=2 steps, VMEM-safe."""
    num_tiles = max(1, math.ceil(n / max_tile))
    if num_tiles == 1 and n >= 32:
        num_tiles = 2            # >=2 grid steps: v7x megacore + DMA/compute overlap
    tile = _round_up(math.ceil(n / num_tiles), 16)   # 16: bf16 sublane-pack friendly

    # VMEM budget: double-buffered x/out tiles + (double-buffered) constant weights.
    w_bytes = ((kdim_pad * C_MID + 4 * C_MID * C_OUT + C_OUT * nc_pad) * in_itemsize
               + (C_MID + C_OUT + nc_pad) * 4)

    def vmem(t):
        return 2 * (4 * t * kdim_pad * in_itemsize + t * nc_pad * 4 + w_bytes)

    while tile > 16 and vmem(tile) > VMEM_BUDGET:
        tile = _round_up(tile // 2, 16)
    return tile


def darts_aux_head_pallas(x_nchw, torch_params, *, init_pool_stride,
                          compute_dtype=jnp.bfloat16, max_tile_n=256, eps=1e-5):
    n, c, h, w = x_nchw.shape
    ph = (h - POOL_K) // init_pool_stride + 1
    pw = (w - POOL_K) // init_pool_stride + 1
    # The Linear(768) classifier requires the 2x2-conv output to be spatially 1x1,
    # i.e. the pooled map must be exactly 2x2 (same structural constraint as the
    # PyTorch module itself).
    assert (ph, pw) == (2, 2), (
        f"aux head needs a 2x2 pooled map, got {ph}x{pw}; "
        "choose H/W/init_pool_stride so that (H-5)//stride+1 == 2")
    n_taps = ph * pw
    kdim = POOL_K * POOL_K * c
    kdim_pad = _round_up(kdim, LANE)
    num_classes = torch_params["fc_w"].shape[0]

    w1e, b1, w2e, b2, wfce, bfce = fold_params(
        torch_params, kdim_pad=kdim_pad, eps=eps, compute_dtype=compute_dtype)
    nc_pad = wfce.shape[1]
    cdt = jnp.dtype(compute_dtype)

    tile_n = _choose_tile_n(n, max_tile_n, kdim_pad, nc_pad, cdt.itemsize)
    n_tiles = math.ceil(n / tile_n)
    n_pad = n_tiles * tile_n

    # im2col straight from NCHW: one (25*C)-feature row per pooling window, built as
    # a 2-D lane-padded slab with (tile, tap, row) ordering so the kernel's x block
    # is already the (4*TN, Kp) matrix matmul-1 wants (no 3-D layout padding, no
    # in-kernel concatenates). Feature order within a tap is (c, kh, kw), matching
    # fold_params. Zero padding (batch rows, features, FC columns) is benign.
    taps = []
    for oh in range(ph):
        for ow in range(pw):
            hs, ws = oh * init_pool_stride, ow * init_pool_stride
            taps.append(
                x_nchw[:, :, hs:hs + POOL_K, ws:ws + POOL_K].reshape(n, kdim))
    xcol = jnp.stack(taps, axis=0).astype(cdt)                         # (4, N, 25C)
    xcol = jnp.pad(xcol, ((0, 0), (0, n_pad - n), (0, kdim_pad - kdim)))
    xcol = (xcol.reshape(n_taps, n_tiles, tile_n, kdim_pad)
                .transpose(1, 0, 2, 3)
                .reshape(n_tiles * n_taps * tile_n, kdim_pad))         # (Ntiles*4*TN, Kp)

    flops = 2 * n_pad * (n_taps * kdim_pad * C_MID + n_taps * C_MID * C_OUT
                         + C_OUT * nc_pad)
    bytes_accessed = int(
        xcol.size * xcol.dtype.itemsize
        + sum(a.size * a.dtype.itemsize for a in (w1e, b1, w2e, b2, wfce, bfce))
        + n_pad * nc_pad * 4)

    kernel = functools.partial(_aux_head_kernel, tile_n=tile_n, n_taps=n_taps)
    out = pl.pallas_call(
        kernel,
        out_shape=jax.ShapeDtypeStruct((n_pad, nc_pad), jnp.float32),
        grid=(n_tiles,),
        in_specs=[
            pl.BlockSpec((n_taps * tile_n, kdim_pad), lambda i: (i, 0)),
            # Weight/bias operands are grid-invariant (constant index_map), so they
            # are fetched once; double-buffer cost is only ~1-2 MiB of VMEM.
            pl.BlockSpec(w1e.shape, lambda i: (0, 0)),
            pl.BlockSpec(b1.shape, lambda i: (0, 0)),
            pl.BlockSpec(w2e.shape, lambda i: (0, 0)),
            pl.BlockSpec(b2.shape, lambda i: (0, 0)),
            pl.BlockSpec(wfce.shape, lambda i: (0, 0)),
            pl.BlockSpec(bfce.shape, lambda i: (0, 0)),
        ],
        out_specs=pl.BlockSpec((tile_n, nc_pad), lambda i: (i, 0)),
        compiler_params=pltpu.CompilerParams(dimension_semantics=("parallel",)),
        cost_estimate=pl.CostEstimate(flops=flops, transcendentals=0,
                                      bytes_accessed=bytes_accessed),
    )(xcol, w1e, b1, w2e, b2, wfce, bfce)

    return out[:n, :num_classes]


def init_torch_params(key, c, num_classes):
    """Deterministic synthetic parameters matching the PyTorch module's shapes."""
    ks = jax.random.split(key, 12)
    p = {}
    p["conv1_w"] = 0.3 * jax.random.normal(ks[0], (C_MID, c, 1, 1), jnp.float32)
    p["bn1_gamma"] = 1.0 + 0.1 * jax.random.normal(ks[1], (C_MID,), jnp.float32)
    p["bn1_beta"] = 0.1 * jax.random.normal(ks[2], (C_MID,), jnp.float32)
    p["bn1_mean"] = 0.05 * jax.random.normal(ks[3], (C_MID,), jnp.float32)
    p["bn1_var"] = 1.0 + 0.2 * jax.random.uniform(ks[4], (C_MID,), jnp.float32)
    p["conv2_w"] = 0.1 * jax.random.normal(ks[5], (C_OUT, C_MID, 2, 2), jnp.float32)
    p["bn2_gamma"] = 1.0 + 0.1 * jax.random.normal(ks[6], (C_OUT,), jnp.float32)
    p["bn2_beta"] = 0.1 * jax.random.normal(ks[7], (C_OUT,), jnp.float32)
    p["bn2_mean"] = 0.05 * jax.random.normal(ks[8], (C_OUT,), jnp.float32)
    p["bn2_var"] = 1.0 + 0.2 * jax.random.uniform(ks[9], (C_OUT,), jnp.float32)
    p["fc_w"] = 0.1 * jax.random.normal(ks[10], (num_classes, C_OUT), jnp.float32)
    p["fc_b"] = 0.1 * jax.random.normal(ks[11], (num_classes,), jnp.float32)
    return p


def reference(x, p, stride, eps=1e-5):
    """Pure-JAX f32 reference mirroring the PyTorch forward (NCHW, eval-mode BN)."""
    hi = jax.lax.Precision.HIGHEST
    x = jnp.maximum(x, 0.0)
    _, _, H, W = x.shape
    ph = (H - POOL_K) // stride + 1
    pw = (W - POOL_K) // stride + 1
    pooled = jnp.stack(
        [jnp.stack(
            [jnp.mean(x[:, :, oh * stride:oh * stride + POOL_K,
                        ow * stride:ow * stride + POOL_K], axis=(2, 3))
             for ow in range(pw)], axis=-1)
         for oh in range(ph)], axis=-2)                                    # (N,C,ph,pw)
    w1 = p["conv1_w"][:, :, 0, 0]                                          # (128, C)
    h = jnp.einsum('nchw,kc->nkhw', pooled, w1, precision=hi)
    sc1 = p["bn1_gamma"] / jnp.sqrt(p["bn1_var"] + eps)
    h = h * sc1[None, :, None, None] + (p["bn1_beta"] - p["bn1_mean"] * sc1)[None, :, None, None]
    h = jnp.maximum(h, 0.0)
    out2 = sum(jnp.einsum('nk,ok->no', h[:, :, kh, kw], p["conv2_w"][:, :, kh, kw],
                          precision=hi)
               for kh in range(2) for kw in range(2))                      # (N, 768)
    sc2 = p["bn2_gamma"] / jnp.sqrt(p["bn2_var"] + eps)
    y = jnp.maximum(out2 * sc2[None, :] + (p["bn2_beta"] - p["bn2_mean"] * sc2)[None, :], 0.0)
    return jnp.dot(y, p["fc_w"].T, precision=hi) + p["fc_b"][None, :]


if __name__ == "__main__":
    key = jax.random.PRNGKey(0)
    kx, kp = jax.random.split(key)

    N, C, H, W = 2, 16, 8, 8          # aux head attaches to an 8x8 feature map
    num_classes = 10
    init_pool_stride = 3              # 8x8 --(5, stride 3)--> 2x2 --(2x2 conv)--> 1x1

    x = jax.random.normal(kx, (N, C, H, W), jnp.float32)
    params = init_torch_params(kp, C, num_classes)

    ref = jax.block_until_ready(reference(x, params, init_pool_stride))

    # f32 compute path: faithful to the (eval-mode) PyTorch forward.
    run_f32 = jax.jit(functools.partial(
        darts_aux_head_pallas, init_pool_stride=init_pool_stride,
        compute_dtype=jnp.float32))
    out_f32 = jax.block_until_ready(run_f32(x, params))
    np.testing.assert_allclose(np.asarray(out_f32), np.asarray(ref), rtol=2e-3, atol=2e-3)
    assert out_f32.shape == (N, num_classes)

    # bf16-operand MXU path (default, v6e/v7x throughput): f32 accumulation,
    # checked with a relative-norm bound appropriate for bf16 rounding.
    run_bf16 = jax.jit(functools.partial(
        darts_aux_head_pallas, init_pool_stride=init_pool_stride,
        compute_dtype=jnp.bfloat16))
    out_bf16 = jax.block_until_ready(run_bf16(x, params))
    rel = (np.linalg.norm(np.asarray(out_bf16) - np.asarray(ref))
           / np.linalg.norm(np.asarray(ref)))
    assert rel < 0.1, f"bf16 path relative error too large: {rel}"

    print("KERNEL_OK")
</pallas_src>

<mosaic_0001>
module attributes {stable_mosaic.version = 11 : i64} {
  func.func @_aux_head_kernel(%arg0: i32, %arg1: memref<64x512xf32, #tpu.memory_space<vmem>>, %arg2: memref<512x128xf32, #tpu.memory_space<vmem>>, %arg3: memref<1x128xf32, #tpu.memory_space<vmem>>, %arg4: memref<512x768xf32, #tpu.memory_space<vmem>>, %arg5: memref<1x768xf32, #tpu.memory_space<vmem>>, %arg6: memref<768x128xf32, #tpu.memory_space<vmem>>, %arg7: memref<1x128xf32, #tpu.memory_space<vmem>>, %arg8: memref<16x128xf32, #tpu.memory_space<vmem>>) attributes {dimension_semantics = [#tpu.dimension_semantics<parallel>], iteration_bounds = array<i64: 1>, scalar_prefetch = 0 : i64, scratch_operands = 0 : i64, tpu.core_type = #tpu.core_type<tc>, window_params = [{transform_indices = @transform_0, window_bounds = array<i64: 64, 512>}, {pipeline_mode = #tpu.pipeline_mode<synchronous>, transform_indices = @transform_1, window_bounds = array<i64: 512, 128>}, {pipeline_mode = #tpu.pipeline_mode<synchronous>, transform_indices = @transform_2, window_bounds = array<i64: 1, 128>}, {pipeline_mode = #tpu.pipeline_mode<synchronous>, transform_indices = @transform_3, window_bounds = array<i64: 512, 768>}, {pipeline_mode = #tpu.pipeline_mode<synchronous>, transform_indices = @transform_4, window_bounds = array<i64: 1, 768>}, {pipeline_mode = #tpu.pipeline_mode<synchronous>, transform_indices = @transform_5, window_bounds = array<i64: 768, 128>}, {pipeline_mode = #tpu.pipeline_mode<synchronous>, transform_indices = @transform_6, window_bounds = array<i64: 1, 128>}, {transform_indices = @transform_7, window_bounds = array<i64: 16, 128>}]} {
    %c0 = arith.constant 0 : index
    %c0_0 = arith.constant 0 : index
    %0 = vector.load %arg1[%c0, %c0_0] : memref<64x512xf32, #tpu.memory_space<vmem>>, vector<64x512xf32>
    %cst = arith.constant 0.000000e+00 : f32
    %1 = vector.broadcast %cst : f32 to vector<64x512xf32>
    %2 = arith.maximumf %0, %1 : vector<64x512xf32>
    %c0_1 = arith.constant 0 : index
    %c0_2 = arith.constant 0 : index
    %3 = vector.load %arg2[%c0_1, %c0_2] : memref<512x128xf32, #tpu.memory_space<vmem>>, vector<512x128xf32>
    %cst_3 = arith.constant dense<0.000000e+00> : vector<64x128xf32>
    %4 = tpu.matmul %2, %3, %cst_3 {dimension_numbers = #tpu.dot_dimension_numbers<[1], [0], [0], [1], [0, 0, 1, 1], [], []>} : vector<64x512xf32>, vector<512x128xf32>, vector<64x128xf32> -> vector<64x128xf32>
    %c0_4 = arith.constant 0 : index
    %c0_5 = arith.constant 0 : index
    %5 = vector.load %arg3[%c0_4, %c0_5] : memref<1x128xf32, #tpu.memory_space<vmem>>, vector<1x128xf32>
    %6 = vector.broadcast %5 : vector<1x128xf32> to vector<64x128xf32>
    %7 = arith.addf %4, %6 : vector<64x128xf32>
    %cst_6 = arith.constant 0.000000e+00 : f32
    %8 = vector.broadcast %cst_6 : f32 to vector<64x128xf32>
    %9 = arith.maximumf %7, %8 : vector<64x128xf32>
    %10 = vector.extract_strided_slice %9 {offsets = [0, 0], sizes = [16, 128], strides = [1, 1]} : vector<64x128xf32> to vector<16x128xf32>
    %c0_7 = arith.constant 0 : index
    %c0_8 = arith.constant 0 : index
    %11 = vector.load %arg4[%c0_7, %c0_8] : memref<512x768xf32, #tpu.memory_space<vmem>>, vector<128x768xf32>
    %cst_9 = arith.constant dense<0.000000e+00> : vector<16x768xf32>
    %12 = tpu.matmul %10, %11, %cst_9 {dimension_numbers = #tpu.dot_dimension_numbers<[1], [0], [0], [1], [0, 0, 1, 1], [], []>} : vector<16x128xf32>, vector<128x768xf32>, vector<16x768xf32> -> vector<16x768xf32>
    %13 = vector.extract_strided_slice %9 {offsets = [16, 0], sizes = [16, 128], strides = [1, 1]} : vector<64x128xf32> to vector<16x128xf32>
    %c128 = arith.constant 128 : index
    %c0_10 = arith.constant 0 : index
    %14 = vector.load %arg4[%c128, %c0_10] : memref<512x768xf32, #tpu.memory_space<vmem>>, vector<128x768xf32>
    %cst_11 = arith.constant dense<0.000000e+00> : vector<16x768xf32>
    %15 = tpu.matmul %13, %14, %cst_11 {dimension_numbers = #tpu.dot_dimension_numbers<[1], [0], [0], [1], [0, 0, 1, 1], [], []>} : vector<16x128xf32>, vector<128x768xf32>, vector<16x768xf32> -> vector<16x768xf32>
    %16 = arith.addf %12, %15 : vector<16x768xf32>
    %17 = vector.extract_strided_slice %9 {offsets = [32, 0], sizes = [16, 128], strides = [1, 1]} : vector<64x128xf32> to vector<16x128xf32>
    %c256 = arith.constant 256 : index
    %c0_12 = arith.constant 0 : index
    %18 = vector.load %arg4[%c256, %c0_12] : memref<512x768xf32, #tpu.memory_space<vmem>>, vector<128x768xf32>
    %cst_13 = arith.constant dense<0.000000e+00> : vector<16x768xf32>
    %19 = tpu.matmul %17, %18, %cst_13 {dimension_numbers = #tpu.dot_dimension_numbers<[1], [0], [0], [1], [0, 0, 1, 1], [], []>} : vector<16x128xf32>, vector<128x768xf32>, vector<16x768xf32> -> vector<16x768xf32>
    %20 = arith.addf %16, %19 : vector<16x768xf32>
    %21 = vector.extract_strided_slice %9 {offsets = [48, 0], sizes = [16, 128], strides = [1, 1]} : vector<64x128xf32> to vector<16x128xf32>
    %c384 = arith.constant 384 : index
    %c0_14 = arith.constant 0 : index
    %22 = vector.load %arg4[%c384, %c0_14] : memref<512x768xf32, #tpu.memory_space<vmem>>, vector<128x768xf32>
    %cst_15 = arith.constant dense<0.000000e+00> : vector<16x768xf32>
    %23 = tpu.matmul %21, %22, %cst_15 {dimension_numbers = #tpu.dot_dimension_numbers<[1], [0], [0], [1], [0, 0, 1, 1], [], []>} : vector<16x128xf32>, vector<128x768xf32>, vector<16x768xf32> -> vector<16x768xf32>
    %24 = arith.addf %20, %23 : vector<16x768xf32>
    %c0_16 = arith.constant 0 : index
    %c0_17 = arith.constant 0 : index
    %25 = vector.load %arg5[%c0_16, %c0_17] : memref<1x768xf32, #tpu.memory_space<vmem>>, vector<1x768xf32>
    %26 = vector.broadcast %25 : vector<1x768xf32> to vector<16x768xf32>
    %27 = arith.addf %24, %26 : vector<16x768xf32>
    %cst_18 = arith.constant 0.000000e+00 : f32
    %28 = vector.broadcast %cst_18 : f32 to vector<16x768xf32>
    %29 = arith.maximumf %27, %28 : vector<16x768xf32>
    %c0_19 = arith.constant 0 : index
    %c0_20 = arith.constant 0 : index
    %30 = vector.load %arg6[%c0_19, %c0_20] : memref<768x128xf32, #tpu.memory_space<vmem>>, vector<768x128xf32>
    %cst_21 = arith.constant dense<0.000000e+00> : vector<16x128xf32>
    %31 = tpu.matmul %29, %30, %cst_21 {dimension_numbers = #tpu.dot_dimension_numbers<[1], [0], [0], [1], [0, 0, 1, 1], [], []>} : vector<16x768xf32>, vector<768x128xf32>, vector<16x128xf32> -> vector<16x128xf32>
    %c0_22 = arith.constant 0 : index
    %c0_23 = arith.constant 0 : index
    %32 = vector.load %arg7[%c0_22, %c0_23] : memref<1x128xf32, #tpu.memory_space<vmem>>, vector<1x128xf32>
    %33 = vector.broadcast %32 : vector<1x128xf32> to vector<16x128xf32>
    %34 = arith.addf %31, %33 : vector<16x128xf32>
    %c0_24 = arith.constant 0 : index
    %c0_25 = arith.constant 0 : index
    %35 = vector.load %arg8[%c0_24, %c0_25] : memref<16x128xf32, #tpu.memory_space<vmem>>, vector<16x128xf32>
    tpu.vector_store %arg8[%c0_24, %c0_25], %34 {strides = array<i32>} : memref<16x128xf32, #tpu.memory_space<vmem>>, vector<16x128xf32>,
    return
  }
  func.func @transform_0(%arg0: i32) -> (i32, i32) {
    %c0_i32 = arith.constant 0 : i32
    %c0_i32_0 = arith.constant 0 : i32
    return %arg0, %c0_i32 : i32, i32
  }
  func.func @transform_1(%arg0: i32) -> (i32, i32) {
    %c0_i32 = arith.constant 0 : i32
    %c0_i32_0 = arith.constant 0 : i32
    %c0_i32_1 = arith.constant 0 : i32
    return %c0_i32, %c0_i32_0 : i32, i32
  }
  func.func @transform_2(%arg0: i32) -> (i32, i32) {
    %c0_i32 = arith.constant 0 : i32
    %c0_i32_0 = arith.constant 0 : i32
    %c0_i32_1 = arith.constant 0 : i32
    return %c0_i32, %c0_i32_0 : i32, i32
  }
  func.func @transform_3(%arg0: i32) -> (i32, i32) {
    %c0_i32 = arith.constant 0 : i32
    %c0_i32_0 = arith.constant 0 : i32
    %c0_i32_1 = arith.constant 0 : i32
    return %c0_i32, %c0_i32_0 : i32, i32
  }
  func.func @transform_4(%arg0: i32) -> (i32, i32) {
    %c0_i32 = arith.constant 0 : i32
    %c0_i32_0 = arith.constant 0 : i32
    %c0_i32_1 = arith.constant 0 : i32
    return %c0_i32, %c0_i32_0 : i32, i32
  }
  func.func @transform_5(%arg0: i32) -> (i32, i32) {
    %c0_i32 = arith.constant 0 : i32
    %c0_i32_0 = arith.constant 0 : i32
    %c0_i32_1 = arith.constant 0 : i32
    return %c0_i32, %c0_i32_0 : i32, i32
  }
  func.func @transform_6(%arg0: i32) -> (i32, i32) {
    %c0_i32 = arith.constant 0 : i32
    %c0_i32_0 = arith.constant 0 : i32
    %c0_i32_1 = arith.constant 0 : i32
    return %c0_i32, %c0_i32_0 : i32, i32
  }
  func.func @transform_7(%arg0: i32) -> (i32, i32) {
    %c0_i32 = arith.constant 0 : i32
    %c0_i32_0 = arith.constant 0 : i32
    return %arg0, %c0_i32 : i32, i32
  }
}

</mosaic_0001>

<bundles_post_ra>
// kernel: darts_aux_head_pallas.1
= control target key start
LH: loop header
LB: loop body
LE: loop exit
PB: predicated region body
PF: predicated region fallthrough
CT: control target
= control target key end

     0   :  { %s4454_s1 = inlined_call_operand.vmem [shape: f32[512,128], index: 1, kind: input, shape index: {}]   ;;  %s4455_s0 = inlined_call_operand.vmem [shape: f32[64,512], index: 0, kind: input, shape index: {}]   ;;  %s4456_s3 = inlined_call_operand.vmem [shape: f32[512,768], index: 3, kind: input, shape index: {}]   ;;  %s4457_s2 = inlined_call_operand.vmem [shape: f32[1,128], index: 2, kind: input, shape index: {}]   ;;  %s4458_s5 = inlined_call_operand.vmem [shape: f32[768,128], index: 5, kind: input, shape index: {}]   ;;  %s4459_s4 = inlined_call_operand.vmem [shape: f32[1,768], index: 4, kind: input, shape index: {}]   ;;  %s4460_s6 = inlined_call_operand.vmem [shape: f32[1,128], index: 6, kind: input, shape index: {}]   ;;  %s4461_s7 = inlined_call_operand.vmem [shape: f32[16,128], index: 7, kind: output, shape index: {}]  }
   0x1   :  { %v121_v0 = vld [vmem:[%s4454_s1 + $0xf8] sm:$0xff]  ;;  %v120_v4 = vld [vmem:[%s4454_s1 + $0xf0] sm:$0xff]  ;;  %v119_v8 = vld [vmem:[%s4454_s1 + $0xe8] sm:$0xff] }
   0x2   :  { %v153_v1 = vld [vmem:[%s4454_s1 + $0x1f8] sm:$0xff]  ;;  %2103 = vmatprep.subr.mxu0 %v121_v0  ;;  %v152_v5 = vld [vmem:[%s4454_s1 + $0x1f0] sm:$0xff]  ;;  %v151_v9 = vld [vmem:[%s4454_s1 + $0x1e8] sm:$0xff] }
   0x3   :  { %v105_v2 = vld [vmem:[%s4454_s1 + $0x78] sm:$0xff]  ;;  %2159 = vmatprep.subr.mxu1 %v153_v1  ;;  %v104_v6 = vld [vmem:[%s4454_s1 + $0x70] sm:$0xff]  ;;  %v103_v10 = vld [vmem:[%s4454_s1 + $0x68] sm:$0xff] }
   0x4   :  { %v137_v3 = vld [vmem:[%s4454_s1 + $0x178] sm:$0xff]  ;;  %2104 = vmatpush3.msra.mxu0 %v105_v2  ;;  %v136_v7 = vld [vmem:[%s4454_s1 + $0x170] sm:$0xff]  ;;  %v135_v11 = vld [vmem:[%s4454_s1 + $0x168] sm:$0xff] }
   0x5   :  { %2160 = vmatpush3.msra.mxu1 %v137_v3  ;;  %2105 = vmatprep.subr.mxu0 %v120_v4  ;;  %v118_v12 = vld [vmem:[%s4454_s1 + $0xe0] sm:$0xff]  ;;  %v117_v16 = vld [vmem:[%s4454_s1 + $0xd8] sm:$0xff]  ;;  %v116_v20 = vld [vmem:[%s4454_s1 + $0xd0] sm:$0xff] }
   0x6   :  { %2161 = vmatprep.subr.mxu1 %v152_v5  ;;  %2106 = vmatpush3.msra.mxu0 %v104_v6  ;;  %v150_v13 = vld [vmem:[%s4454_s1 + $0x1e0] sm:$0xff]  ;;  %v149_v17 = vld [vmem:[%s4454_s1 + $0x1d8] sm:$0xff]  ;;  %v148_v21 = vld [vmem:[%s4454_s1 + $0x1d0] sm:$0xff] }
   0x7   :  { %2162 = vmatpush3.msra.mxu1 %v136_v7  ;;  %2107 = vmatprep.subr.mxu0 %v119_v8  ;;  %v102_v14 = vld [vmem:[%s4454_s1 + $0x60] sm:$0xff]  ;;  %v101_v18 = vld [vmem:[%s4454_s1 + $0x58] sm:$0xff]  ;;  %v100_v22 = vld [vmem:[%s4454_s1 + $0x50] sm:$0xff] }
   0x8   :  { %2163 = vmatprep.subr.mxu1 %v151_v9  ;;  %v134_v15 = vld [vmem:[%s4454_s1 + $0x160] sm:$0xff]  ;;  %2108 = vmatpush3.msra.mxu0 %v103_v10  ;;  %v133_v19 = vld [vmem:[%s4454_s1 + $0x158] sm:$0xff]  ;;  %v132_v23 = vld [vmem:[%s4454_s1 + $0x150] sm:$0xff] }
   0x9   :  { %2164 = vmatpush3.msra.mxu1 %v135_v11  ;;  %2109 = vmatprep.subr.mxu0 %v118_v12  ;;  %v115_v24 = vld [vmem:[%s4454_s1 + $0xc8] sm:$0xff]  ;;  %v114_v28 = vld [vmem:[%s4454_s1 + $0xc0] sm:$0xff]  ;;  %v113_v32 = vld [vmem:[%s4454_s1 + $0xb8] sm:$0xff] }
   0xa   :  { %2165 = vmatprep.subr.mxu1 %v150_v13  ;;  %2110 = vmatpush3.msra.mxu0 %v102_v14  ;;  %v147_v25 = vld [vmem:[%s4454_s1 + $0x1c8] sm:$0xff]  ;;  %v146_v29 = vld [vmem:[%s4454_s1 + $0x1c0] sm:$0xff]  ;;  %v145_v33 = vld [vmem:[%s4454_s1 + $0x1b8] sm:$0xff] }
   0xb   :  { %2166 = vmatpush3.msra.mxu1 %v134_v15  ;;  %2111 = vmatprep.subr.mxu0 %v117_v16  ;;  %v99_v26 = vld [vmem:[%s4454_s1 + $0x48] sm:$0xff]  ;;  %v98_v30 = vld [vmem:[%s4454_s1 + $0x40] sm:$0xff]  ;;  %v97_v34 = vld [vmem:[%s4454_s1 + $0x38] sm:$0xff] }
   0xc   :  { %2167 = vmatprep.subr.mxu1 %v149_v17  ;;  %2112 = vmatpush3.msra.mxu0 %v101_v18  ;;  %v131_v27 = vld [vmem:[%s4454_s1 + $0x148] sm:$0xff]  ;;  %v130_v31 = vld [vmem:[%s4454_s1 + $0x140] sm:$0xff]  ;;  %v129_v35 = vld [vmem:[%s4454_s1 + $0x138] sm:$0xff] }
   0xd   :  { %2168 = vmatpush3.msra.mxu1 %v133_v19  ;;  %2113 = vmatprep.subr.mxu0 %v116_v20  ;;  %v112_v36 = vld [vmem:[%s4454_s1 + $0xb0] sm:$0xff]  ;;  %v111_v40 = vld [vmem:[%s4454_s1 + $0xa8] sm:$0xff]  ;;  %v110_v44 = vld [vmem:[%s4454_s1 + $0xa0] sm:$0xff] }
   0xe   :  { %2169 = vmatprep.subr.mxu1 %v148_v21  ;;  %2114 = vmatpush3.msra.mxu0 %v100_v22  ;;  %v144_v37 = vld [vmem:[%s4454_s1 + $0x1b0] sm:$0xff]  ;;  %v143_v41 = vld [vmem:[%s4454_s1 + $0x1a8] sm:$0xff]  ;;  %v142_v45 = vld [vmem:[%s4454_s1 + $0x1a0] sm:$0xff] }
   0xf   :  { %2170 = vmatpush3.msra.mxu1 %v132_v23  ;;  %2115 = vmatprep.subr.mxu0 %v115_v24  ;;  %v96_v38 = vld [vmem:[%s4454_s1 + $0x30] sm:$0xff]  ;;  %v95_v42 = vld [vmem:[%s4454_s1 + $0x28] sm:$0xff]  ;;  %v94_v46 = vld [vmem:[%s4454_s1 + $0x20] sm:$0xff] }
  0x10   :  { %2171 = vmatprep.subr.mxu1 %v147_v25  ;;  %2116 = vmatpush3.msra.mxu0 %v99_v26  ;;  %v128_v39 = vld [vmem:[%s4454_s1 + $0x130] sm:$0xff]  ;;  %v127_v43 = vld [vmem:[%s4454_s1 + $0x128] sm:$0xff]  ;;  %v126_v47 = vld [vmem:[%s4454_s1 + $0x120] sm:$0xff] }
  0x11   :  { %2172 = vmatpush3.msra.mxu1 %v131_v27  ;;  %2117 = vmatprep.subr.mxu0 %v114_v28  ;;  %v109_v48 = vld [vmem:[%s4454_s1 + $0x98] sm:$0xff]  ;;  %v108_v52 = vld [vmem:[%s4454_s1 + $0x90] sm:$0xff]  ;;  %v107_v56 = vld [vmem:[%s4454_s1 + $0x88] sm:$0xff] }
  0x12   :  { %2173 = vmatprep.subr.mxu1 %v146_v29  ;;  %2118 = vmatpush3.msra.mxu0 %v98_v30  ;;  %v141_v49 = vld [vmem:[%s4454_s1 + $0x198] sm:$0xff]  ;;  %v140_v53 = vld [vmem:[%s4454_s1 + $0x190] sm:$0xff]  ;;  %v139_v57 = vld [vmem:[%s4454_s1 + $0x188] sm:$0xff] }
  0x13   :  { %2174 = vmatpush3.msra.mxu1 %v130_v31  ;;  %2119 = vmatprep.subr.mxu0 %v113_v32  ;;  %v93_v50 = vld [vmem:[%s4454_s1 + $0x18] sm:$0xff]  ;;  %v92_v54 = vld [vmem:[%s4454_s1 + $0x10] sm:$0xff]  ;;  %v27_v58 = vld [vmem:[%s4455_s0 + $0x8] sm:$0xff] }
  0x14   :  { %2175 = vmatprep.subr.mxu1 %v145_v33  ;;  %2120 = vmatpush3.msra.mxu0 %v97_v34  ;;  %v125_v51 = vld [vmem:[%s4454_s1 + $0x118] sm:$0xff]  ;;  %v124_v55 = vld [vmem:[%s4454_s1 + $0x110] sm:$0xff]  ;;  %v91_v59 = vld [vmem:[%s4454_s1 + $0x8] sm:$0xff]  ;;  %v59_v2 = vmax.f32 %v27_v58, 0.0 }
  0x15   :  { %2176 = vmatpush3.msra.mxu1 %v129_v35  ;;  %2121 = vmatprep.subr.mxu0 %v112_v36  ;;  %v123_v60 = vld [vmem:[%s4454_s1 + $0x108] sm:$0xff]  ;;  %v29_v61 = vld [vmem:[%s4455_s0 + $0x18] sm:$0xff]  ;;  %v106_v62 = vld [vmem:[%s4454_s1 + $0x80] sm:$0xff] }
  0x16   :  { %2177 = vmatprep.subr.mxu1 %v144_v37  ;;  %2122 = vmatpush3.msra.mxu0 %v96_v38  ;;  %v26_v63 = vld [vmem:[%s4455_s0] sm:$0xff]  ;;  %v28_v0 = vld [vmem:[%s4455_s0 + $0x10] sm:$0xff]  ;;  %v31_v3 = vld [vmem:[%s4455_s0 + $0x28] sm:$0xff]  ;;  %v61_v6 = vmax.f32 %v29_v61, 0.0 }
  0x17   :  { %2178 = vmatpush3.msra.mxu1 %v128_v39  ;;  %2123 = vmatprep.subr.mxu0 %v111_v40  ;;  %v138_v1 = vld [vmem:[%s4454_s1 + $0x180] sm:$0xff]  ;;  %v33_v4 = vld [vmem:[%s4455_s0 + $0x38] sm:$0xff]  ;;  %v58_v8 = vmax.f32 %v26_v63, 0.0  ;;  %v60_v9 = vmax.f32 %v28_v0, 0.0  ;;  %v63_v10 = vmax.f32 %v31_v3, 0.0  ;;  %v32_v13 = vld [vmem:[%s4455_s0 + $0x30] sm:$0xff] }
  0x18   :  { %2179 = vmatprep.subr.mxu1 %v143_v41  ;;  %2124 = vmatpush3.msra.mxu0 %v95_v42  ;;  %v90_v5 = vld [vmem:[%s4454_s1] sm:$0xff]  ;;  %v65_v11 = vmax.f32 %v33_v4, 0.0  ;;  %v35_v14 = vld [vmem:[%s4455_s0 + $0x48] sm:$0xff]  ;;  %v37_v15 = vld [vmem:[%s4455_s0 + $0x58] sm:$0xff]  ;;  %v64_v19 = vmax.f32 %v32_v13, 0.0 }
  0x19   :  { %2180 = vmatpush3.msra.mxu1 %v127_v43  ;;  %2125 = vmatprep.subr.mxu0 %v110_v44  ;;  %v122_v7 = vld [vmem:[%s4454_s1 + $0x100] sm:$0xff]  ;;  %v566_v16 = vld [vmem:[%s4456_s3 + $0x5d8] sm:$0xff]  ;;  %v568_v17 = vld [vmem:[%s4456_s3 + $0x5e8] sm:$0xff]  ;;  %v67_v22 = vmax.f32 %v35_v14, 0.0  ;;  %v69_v23 = vmax.f32 %v37_v15, 0.0 }
  0x1a   :  { %2181 = vmatprep.subr.mxu1 %v142_v45  ;;  %2126 = vmatpush3.msra.mxu0 %v94_v46  ;;  %v30_v12 = vld [vmem:[%s4455_s0 + $0x20] sm:$0xff]  ;;  %v565_v20 = vld [vmem:[%s4456_s3 + $0x5d0] sm:$0xff]  ;;  %v39_v26 = vld [vmem:[%s4455_s0 + $0x68] sm:$0xff] }
  0x1b   :  { %2182 = vmatpush3.msra.mxu1 %v126_v47  ;;  %2127 = vmatprep.subr.mxu0 %v109_v48  ;;  %v62_v18 = vmax.f32 %v30_v12, 0.0  ;;  %v567_v21 = vld [vmem:[%s4456_s3 + $0x5e0] sm:$0xff]  ;;  %v36_v25 = vld [vmem:[%s4455_s0 + $0x50] sm:$0xff]  ;;  %v41_v27 = vld [vmem:[%s4455_s0 + $0x78] sm:$0xff]  ;;  %v71_v34 = vmax.f32 %v39_v26, 0.0 }
  0x1c   :  { %2183 = vmatprep.subr.mxu1 %v141_v49  ;;  %2128 = vmatpush3.msra.mxu0 %v93_v50  ;;  %v34_v24 = vld [vmem:[%s4455_s0 + $0x40] sm:$0xff]  ;;  %v560_v28 = vld [vmem:[%s4456_s3 + $0x5a8] sm:$0xff]  ;;  %v562_v29 = vld [vmem:[%s4456_s3 + $0x5b8] sm:$0xff]  ;;  %v68_v31 = vmax.f32 %v36_v25, 0.0  ;;  %v73_v36 = vmax.f32 %v41_v27, 0.0 }
  0x1d   :  { %2184 = vmatpush3.msra.mxu1 %v125_v51  ;;  %2129 = vmatprep.subr.mxu0 %v108_v52  ;;  %v66_v30 = vmax.f32 %v34_v24, 0.0  ;;  %v559_v32 = vld [vmem:[%s4456_s3 + $0x5a0] sm:$0xff]  ;;  %v561_v33 = vld [vmem:[%s4456_s3 + $0x5b0] sm:$0xff]  ;;  %v43_v38 = vld [vmem:[%s4455_s0 + $0x88] sm:$0xff] }
  0x1e   :  { %2185 = vmatprep.subr.mxu1 %v140_v53  ;;  %2130 = vmatpush3.msra.mxu0 %v92_v54  ;;  %v38_v35 = vld [vmem:[%s4455_s0 + $0x60] sm:$0xff]  ;;  %v40_v37 = vld [vmem:[%s4455_s0 + $0x70] sm:$0xff]  ;;  %v45_v39 = vld [vmem:[%s4455_s0 + $0x98] sm:$0xff]  ;;  %v75_v46 = vmax.f32 %v43_v38, 0.0 }
  0x1f   :  { %2186 = vmatpush3.msra.mxu1 %v124_v55  ;;  %2131 = vmatprep.subr.mxu0 %v107_v56  ;;  %v554_v40 = vld [vmem:[%s4456_s3 + $0x578] sm:$0xff]  ;;  %v556_v41 = vld [vmem:[%s4456_s3 + $0x588] sm:$0xff]  ;;  %v70_v42 = vmax.f32 %v38_v35, 0.0  ;;  %v72_v43 = vmax.f32 %v40_v37, 0.0  ;;  %v553_v44 = vld [vmem:[%s4456_s3 + $0x570] sm:$0xff]  ;;  %v77_v48 = vmax.f32 %v45_v39, 0.0 }
  0x20   :  { %2187 = vmatprep.subr.mxu1 %v139_v57  ;;  %2132 = vmatpush3.msra.mxu0 %v91_v59  ;;  %v555_v45 = vld [vmem:[%s4456_s3 + $0x580] sm:$0xff]  ;;  %v44_v49 = vld [vmem:[%s4455_s0 + $0x90] sm:$0xff]  ;;  %v47_v50 = vld [vmem:[%s4455_s0 + $0xa8] sm:$0xff] }
  0x21   :  { %2188 = vmatpush3.msra.mxu1 %v123_v60  ;;  %2133 = vmatprep.subr.mxu0 %v106_v62  ;;  %v42_v47 = vld [vmem:[%s4455_s0 + $0x80] sm:$0xff]  ;;  %v49_v51 = vld [vmem:[%s4455_s0 + $0xb8] sm:$0xff]  ;;  %v548_v52 = vld [vmem:[%s4456_s3 + $0x548] sm:$0xff]  ;;  %v76_v55 = vmax.f32 %v44_v49, 0.0  ;;  %v79_v58 = vmax.f32 %v47_v50, 0.0 }
  0x22   :  { %2189 = vmatprep.subr.mxu1 %v138_v1  ;;  %2134 = vmatpush3.msra.mxu0 %v90_v5  ;;  %v550_v53 = vld [vmem:[%s4456_s3 + $0x558] sm:$0xff]  ;;  %v74_v54 = vmax.f32 %v42_v47, 0.0  ;;  %v547_v56 = vld [vmem:[%s4456_s3 + $0x540] sm:$0xff]  ;;  %v549_v57 = vld [vmem:[%s4456_s3 + $0x550] sm:$0xff]  ;;  %v81_v60 = vmax.f32 %v49_v51, 0.0 }
  0x23   :  { %225 = vmatprep.mubr.f32.mxu0 %v59_v2  ;;  %2190 = vmatpush3.msra.mxu1 %v122_v7  ;;  %v46_v59 = vld [vmem:[%s4455_s0 + $0xa0] sm:$0xff]  ;;  %v48_v61 = vld [vmem:[%s4455_s0 + $0xb0] sm:$0xff]  ;;  %v51_v62 = vld [vmem:[%s4455_s0 + $0xc8] sm:$0xff] }
  0x24   :  { %330 = vmatprep.mubr.f32.mxu1 %v61_v6  ;;  %226 = vmatmul.mubr.f32.vlgmr.msra.gmra.mxu0 %v58_v8  ;;  %v53_v63 = vld [vmem:[%s4455_s0 + $0xd8] sm:$0xff]  ;;  %v544_v1 = vld [vmem:[%s4456_s3 + $0x528] sm:$0xff]  ;;  %v78_v2 = vmax.f32 %v46_v59, 0.0  ;;  %v80_v3 = vmax.f32 %v48_v61, 0.0  ;;  %v541_v4 = vld [vmem:[%s4456_s3 + $0x510] sm:$0xff]  ;;  %v83_v6 = vmax.f32 %v51_v62, 0.0 }
  0x25   :  { %331 = vmatmul.mubr.f32.vlgmr.msra.gmra.mxu1 %v60_v9  ;;  %230 = vmatprep.mubr.f32.mxu0 %v63_v10  ;;  %v542_v0 = vld [vmem:[%s4456_s3 + $0x518] sm:$0xff]  ;;  %v543_v5 = vld [vmem:[%s4456_s3 + $0x520] sm:$0xff]  ;;  %v85_v8 = vmax.f32 %v53_v63, 0.0  ;;  %v52_v9 = vld [vmem:[%s4455_s0 + $0xd0] sm:$0xff] }
  0x26   :  { %335 = vmatprep.mubr.f32.mxu1 %v65_v11  ;;  %571 = vmatprep.subr.mxu0 %v566_v16  ;;  %v50_v7 = vld [vmem:[%s4455_s0 + $0xc0] sm:$0xff]  ;;  %v55_v10 = vld [vmem:[%s4455_s0 + $0xe8] sm:$0xff]  ;;  %v57_v11 = vld [vmem:[%s4455_s0 + $0xf8] sm:$0xff]  ;;  %v84_v15 = vmax.f32 %v52_v9, 0.0 }
  0x27   :  { %648 = vmatprep.subr.mxu1 %v568_v17  ;;  %572 = vmatpush1.msra.mxu0 %v565_v20  ;;  %v536_v12 = vld [vmem:[%s4456_s3 + $0x4e8] sm:$0xff]  ;;  %v538_v13 = vld [vmem:[%s4456_s3 + $0x4f8] sm:$0xff]  ;;  %v82_v14 = vmax.f32 %v50_v7, 0.0  ;;  %v535_v16 = vld [vmem:[%s4456_s3 + $0x4e0] sm:$0xff]  ;;  %v89_v20 = vmax.f32 %v57_v11, 0.0 }
  0x28   :  { %649 = vmatpush1.msra.mxu1 %v567_v21  ;;  %231 = vmatmul.mubr.f32.gmra.mxu0 %v62_v18  ;;  %v537_v17 = vld [vmem:[%s4456_s3 + $0x4f0] sm:$0xff]  ;;  %v87_v18 = vmax.f32 %v55_v10, 0.0  ;;  %v531_v27 = vld [vmem:[%s4456_s3 + $0x4c0] sm:$0xff]  ;;  %v514_v37 = vld [vmem:[%s4456_s3 + $0x438] sm:$0xff] }
  0x29   :  { %336 = vmatmul.mubr.f32.gmra.mxu1 %v64_v19  ;;  %235 = vmatprep.mubr.f32.mxu0 %v67_v22  ;;  %v54_v19 = vld [vmem:[%s4455_s0 + $0xe0] sm:$0xff]  ;;  %v56_v21 = vld [vmem:[%s4455_s0 + $0xf0] sm:$0xff]  ;;  %v530_v22 = vld [vmem:[%s4456_s3 + $0x4b8] sm:$0xff] }
  0x2a   :  { %340 = vmatprep.mubr.f32.mxu1 %v69_v23  ;;  %573 = vmatprep.subr.mxu0 %v560_v28  ;;  %v532_v23 = vld [vmem:[%s4456_s3 + $0x4c8] sm:$0xff]  ;;  %v86_v24 = vmax.f32 %v54_v19, 0.0  ;;  %v88_v25 = vmax.f32 %v56_v21, 0.0  ;;  %v529_v26 = vld [vmem:[%s4456_s3 + $0x4b0] sm:$0xff]  ;;  %v519_v35 = vld [vmem:[%s4456_s3 + $0x460] sm:$0xff] }
  0x2b   :  { %650 = vmatprep.subr.mxu1 %v562_v29  ;;  %574 = vmatpush1.msra.mxu0 %v559_v32  ;;  %v524_v28 = vld [vmem:[%s4456_s3 + $0x488] sm:$0xff]  ;;  %v526_v29 = vld [vmem:[%s4456_s3 + $0x498] sm:$0xff]  ;;  %v511_v38 = vld [vmem:[%s4456_s3 + $0x420] sm:$0xff] }
  0x2c   :  { %651 = vmatpush1.msra.mxu1 %v561_v33  ;;  %236 = vmatmul.mubr.f32.gmra.mxu0 %v66_v30  ;;  %v523_v30 = vld [vmem:[%s4456_s3 + $0x480] sm:$0xff]  ;;  %v518_v32 = vld [vmem:[%s4456_s3 + $0x458] sm:$0xff]  ;;  %v520_v33 = vld [vmem:[%s4456_s3 + $0x468] sm:$0xff] }
  0x2d   :  { %341 = vmatmul.mubr.f32.gmra.mxu1 %v68_v31  ;;  %240 = vmatprep.mubr.f32.mxu0 %v71_v34  ;;  %v525_v31 = vld [vmem:[%s4456_s3 + $0x490] sm:$0xff]  ;;  %v496_v49 = vld [vmem:[%s4456_s3 + $0x3a8] sm:$0xff]  ;;  %v495_v51 = vld [vmem:[%s4456_s3 + $0x3a0] sm:$0xff] }
  0x2e   :  { %345 = vmatprep.mubr.f32.mxu1 %v73_v36  ;;  %575 = vmatprep.subr.mxu0 %v554_v40  ;;  %v517_v34 = vld [vmem:[%s4456_s3 + $0x450] sm:$0xff]  ;;  %v512_v36 = vld [vmem:[%s4456_s3 + $0x428] sm:$0xff]  ;;  %v506_v40 = vld [vmem:[%s4456_s3 + $0x3f8] sm:$0xff] }
  0x2f   :  { %652 = vmatprep.subr.mxu1 %v556_v41  ;;  %576 = vmatpush1.msra.mxu0 %v553_v44  ;;  %v513_v39 = vld [vmem:[%s4456_s3 + $0x430] sm:$0xff]  ;;  %v508_v41 = vld [vmem:[%s4456_s3 + $0x408] sm:$0xff]  ;;  %v483_v59 = vld [vmem:[%s4456_s3 + $0x340] sm:$0xff] }
  0x30   :  { %653 = vmatpush1.msra.mxu1 %v555_v45  ;;  %241 = vmatmul.mubr.f32.gmra.mxu0 %v70_v42  ;;  %v505_v42 = vld [vmem:[%s4456_s3 + $0x3f0] sm:$0xff]  ;;  %v500_v44 = vld [vmem:[%s4456_s3 + $0x3c8] sm:$0xff]  ;;  %v502_v45 = vld [vmem:[%s4456_s3 + $0x3d8] sm:$0xff] }
  0x31   :  { %346 = vmatmul.mubr.f32.gmra.mxu1 %v72_v43  ;;  %245 = vmatprep.mubr.f32.mxu0 %v75_v46  ;;  %v507_v43 = vld [vmem:[%s4456_s3 + $0x400] sm:$0xff]  ;;  %v501_v47 = vld [vmem:[%s4456_s3 + $0x3d0] sm:$0xff]  ;;  %v478_v61 = vld [vmem:[%s4456_s3 + $0x318] sm:$0xff] }
  0x32   :  { %350 = vmatprep.mubr.f32.mxu1 %v77_v48  ;;  %577 = vmatprep.subr.mxu0 %v548_v52  ;;  %v499_v46 = vld [vmem:[%s4456_s3 + $0x3c0] sm:$0xff]  ;;  %v494_v48 = vld [vmem:[%s4456_s3 + $0x398] sm:$0xff]  ;;  %v493_v50 = vld [vmem:[%s4456_s3 + $0x390] sm:$0xff] }
  0x33   :  { %654 = vmatprep.subr.mxu1 %v550_v53  ;;  %578 = vmatpush1.msra.mxu0 %v547_v56  ;;  %v488_v52 = vld [vmem:[%s4456_s3 + $0x368] sm:$0xff]  ;;  %v490_v53 = vld [vmem:[%s4456_s3 + $0x378] sm:$0xff]  ;;  %v475_v62 = vld [vmem:[%s4456_s3 + $0x300] sm:$0xff] }
  0x34   :  { %655 = vmatpush1.msra.mxu1 %v549_v57  ;;  %246 = vmatmul.mubr.f32.gmra.mxu0 %v74_v54  ;;  %v487_v54 = vld [vmem:[%s4456_s3 + $0x360] sm:$0xff]  ;;  %v482_v56 = vld [vmem:[%s4456_s3 + $0x338] sm:$0xff]  ;;  %v484_v57 = vld [vmem:[%s4456_s3 + $0x348] sm:$0xff] }
  0x35   :  { %351 = vmatmul.mubr.f32.gmra.mxu1 %v76_v55  ;;  %250 = vmatprep.mubr.f32.mxu0 %v79_v58  ;;  %v489_v55 = vld [vmem:[%s4456_s3 + $0x370] sm:$0xff] }
  0x36   :  { %355 = vmatprep.mubr.f32.mxu1 %v81_v60  ;;  %579 = vmatprep.subr.mxu0 %v542_v0  ;;  %v481_v58 = vld [vmem:[%s4456_s3 + $0x330] sm:$0xff]  ;;  %v476_v60 = vld [vmem:[%s4456_s3 + $0x308] sm:$0xff]  ;;  %v570_v0 = vld [vmem:[%s4456_s3 + $0x5f8] sm:$0xff] }
  0x37   :  { %656 = vmatprep.subr.mxu1 %v544_v1  ;;  %580 = vmatpush1.msra.mxu0 %v541_v4  ;;  %v477_v63 = vld [vmem:[%s4456_s3 + $0x310] sm:$0xff]  ;;  %v470_v1 = vld [vmem:[%s4456_s3 + $0x2d8] sm:$0xff] }
  0x38   :  { %657 = vmatpush1.msra.mxu1 %v543_v5  ;;  %251 = vmatmul.mubr.f32.gmra.mxu0 %v78_v2  ;;  %v2363_v2 = vmov 0.0   ;;  %v569_v21 = vld [vmem:[%s4456_s3 + $0x5f0] sm:$0xff] }
  0x39   :  { %356 = vmatmul.mubr.f32.gmra.mxu1 %v80_v3  ;;  %255 = vmatprep.mubr.f32.mxu0 %v83_v6 }
  0x3a   :  { %360 = vmatprep.mubr.f32.mxu1 %v85_v8  ;;  %581 = vmatprep.subr.mxu0 %v536_v12 }
  0x3b   :  { %658 = vmatprep.subr.mxu1 %v538_v13  ;;  %582 = vmatpush1.msra.mxu0 %v535_v16  ;;  %v2911_v16 = vld [vmem:[%s4457_s2] ss:$0 sm:$0xff] }
  0x3c   :  { %659 = vmatpush1.msra.mxu1 %v537_v17  ;;  %256 = vmatmul.mubr.f32.gmra.mxu0 %v82_v14 }
  0x3d   :  { %361 = vmatmul.mubr.f32.gmra.mxu1 %v84_v15  ;;  %260 = vmatprep.mubr.f32.mxu0 %v87_v18 }
  0x3e   :  { %365 = vmatprep.mubr.f32.mxu1 %v89_v20  ;;  %583 = vmatprep.subr.mxu0 %v530_v22  ;;  %v469_v22 = vld [vmem:[%s4456_s3 + $0x2d0] sm:$0xff] }
  0x3f   :  { %660 = vmatprep.subr.mxu1 %v532_v23  ;;  %584 = vmatpush1.msra.mxu0 %v529_v26  ;;  %v564_v23 = vld [vmem:[%s4456_s3 + $0x5c8] sm:$0xff]  ;;  %v463_v26 = vld [vmem:[%s4456_s3 + $0x2a0] sm:$0xff] }
  0x40   :  { %661 = vmatpush1.msra.mxu1 %v531_v27  ;;  %261 = vmatmul.mubr.f32.gmra.mxu0 %v86_v24  ;;  %v464_v24 = vld [vmem:[%s4456_s3 + $0x2a8] sm:$0xff]  ;;  %v558_v27 = vld [vmem:[%s4456_s3 + $0x598] sm:$0xff] }
  0x41   :  { %366 = vmatmul.mubr.f32.gmra.mxu1 %v88_v25  ;;  %585 = vmatprep.subr.mxu0 %v524_v28  ;;  %v563_v25 = vld [vmem:[%s4456_s3 + $0x5c0] sm:$0xff]  ;;  %v458_v28 = vld [vmem:[%s4456_s3 + $0x278] sm:$0xff] }
  0x42   :  { %662 = vmatprep.subr.mxu1 %v526_v29  ;;  %586 = vmatpush1.msra.mxu0 %v523_v30  ;;  %v557_v29 = vld [vmem:[%s4456_s3 + $0x590] sm:$0xff] }
  0x43   :  { %663 = vmatpush1.msra.mxu1 %v525_v31  ;;  %587 = vmatprep.subr.mxu0 %v518_v32  ;;  %v457_v30 = vld [vmem:[%s4456_s3 + $0x270] sm:$0xff]  ;;  %v552_v31 = vld [vmem:[%s4456_s3 + $0x568] sm:$0xff] }
  0x44   :  { %664 = vmatprep.subr.mxu1 %v520_v33  ;;  %588 = vmatpush1.msra.mxu0 %v517_v34  ;;  %v452_v32 = vld [vmem:[%s4456_s3 + $0x248] sm:$0xff]  ;;  %v551_v34 = vld [vmem:[%s4456_s3 + $0x560] sm:$0xff] }
  0x45   :  { %665 = vmatpush1.msra.mxu1 %v519_v35  ;;  %589 = vmatprep.subr.mxu0 %v512_v36  ;;  %v451_v35 = vld [vmem:[%s4456_s3 + $0x240] sm:$0xff]  ;;  %v546_v36 = vld [vmem:[%s4456_s3 + $0x538] sm:$0xff] }
  0x46   :  { %666 = vmatprep.subr.mxu1 %v514_v37  ;;  %590 = vmatpush1.msra.mxu0 %v511_v38  ;;  %v446_v37 = vld [vmem:[%s4456_s3 + $0x218] sm:$0xff]  ;;  %v545_v38 = vld [vmem:[%s4456_s3 + $0x530] sm:$0xff] }
  0x47   :  { %667 = vmatpush1.msra.mxu1 %v513_v39  ;;  %591 = vmatprep.subr.mxu0 %v506_v40  ;;  %v445_v39 = vld [vmem:[%s4456_s3 + $0x210] sm:$0xff]  ;;  %v540_v40 = vld [vmem:[%s4456_s3 + $0x508] sm:$0xff] }
  0x48   :  { %668 = vmatprep.subr.mxu1 %v508_v41  ;;  %592 = vmatpush1.msra.mxu0 %v505_v42  ;;  %v440_v41 = vld [vmem:[%s4456_s3 + $0x1e8] sm:$0xff] }
  0x49   :  { %669 = vmatpush1.msra.mxu1 %v507_v43  ;;  %593 = vmatprep.subr.mxu0 %v500_v44  ;;  %v539_v44 = vld [vmem:[%s4456_s3 + $0x500] sm:$0xff] }
  0x4a   :  { %670 = vmatprep.subr.mxu1 %v502_v45  ;;  %594 = vmatpush1.msra.mxu0 %v499_v46  ;;  %v439_v45 = vld [vmem:[%s4456_s3 + $0x1e0] sm:$0xff]  ;;  %v534_v46 = vld [vmem:[%s4456_s3 + $0x4d8] sm:$0xff] }
  0x4b   :  { %671 = vmatpush1.msra.mxu1 %v501_v47  ;;  %595 = vmatprep.subr.mxu0 %v494_v48  ;;  %v434_v47 = vld [vmem:[%s4456_s3 + $0x1b8] sm:$0xff]  ;;  %v533_v48 = vld [vmem:[%s4456_s3 + $0x4d0] sm:$0xff] }
  0x4c   :  { %672 = vmatprep.subr.mxu1 %v496_v49  ;;  %596 = vmatpush1.msra.mxu0 %v493_v50  ;;  %v433_v49 = vld [vmem:[%s4456_s3 + $0x1b0] sm:$0xff] }
  0x4d   :  { %673 = vmatpush1.msra.mxu1 %v495_v51  ;;  %597 = vmatprep.subr.mxu0 %v488_v52  ;;  %v528_v51 = vld [vmem:[%s4456_s3 + $0x4a8] sm:$0xff] }
  0x4e   :  { %674 = vmatprep.subr.mxu1 %v490_v53  ;;  %598 = vmatpush1.msra.mxu0 %v487_v54  ;;  %v428_v52 = vld [vmem:[%s4456_s3 + $0x188] sm:$0xff]  ;;  %v527_v54 = vld [vmem:[%s4456_s3 + $0x4a0] sm:$0xff] }
  0x4f   :  { %675 = vmatpush1.msra.mxu1 %v489_v55  ;;  %599 = vmatprep.subr.mxu0 %v482_v56  ;;  %v427_v55 = vld [vmem:[%s4456_s3 + $0x180] sm:$0xff]  ;;  %v522_v56 = vld [vmem:[%s4456_s3 + $0x478] sm:$0xff] }
  0x50   :  { %676 = vmatprep.subr.mxu1 %v484_v57  ;;  %600 = vmatpush1.msra.mxu0 %v481_v58  ;;  %v422_v57 = vld [vmem:[%s4456_s3 + $0x158] sm:$0xff] }
  0x51   :  { %677 = vmatpush1.msra.mxu1 %v483_v59  ;;  %601 = vmatprep.subr.mxu0 %v476_v60  ;;  %v521_v59 = vld [vmem:[%s4456_s3 + $0x470] sm:$0xff] }
  0x52   :  { %678 = vmatprep.subr.mxu1 %v478_v61  ;;  %602 = vmatpush1.msra.mxu0 %v475_v62  ;;  %v421_v60 = vld [vmem:[%s4456_s3 + $0x150] sm:$0xff]  ;;  %v516_v62 = vld [vmem:[%s4456_s3 + $0x448] sm:$0xff] }
  0x53   :  { %679 = vmatpush1.msra.mxu1 %v477_v63  ;;  %635 = vmatprep.mubr.f32.mxu0 %v2363_v2  ;;  %v416_v63 = vld [vmem:[%s4456_s3 + $0x128] sm:$0xff] }
  0x54   :  { %712 = vmatprep.mubr.f32.mxu1 %v2363_v2  ;;  %725 = vmatprep.subr.mxu0 %v570_v0  ;;  %v515_v0 = vld [vmem:[%s4456_s3 + $0x440] sm:$0xff] }
  0x55   :  { %802 = vmatprep.subr.mxu1 %v470_v1  ;;  %v415_v1 = vld [vmem:[%s4456_s3 + $0x120] sm:$0xff] }
  0xe4   :  { %v2892_v3 = vpop.f32.mrf.mxu0 }
  0xe5   :  { %v2894_v4 = vpop.f32.mrf.mxu1 }
  0xe6   :  { %v2896_v5 = vpop.f32.mrf.mxu0 }
  0xe7   :  { %v2898_v6 = vpop.f32.mrf.mxu1 }
  0xe8   :  { %v2900_v7 = vpop.f32.mrf.mxu0 }
  0xe9   :  { %v2902_v8 = vpop.f32.mrf.mxu1 }
  0xea   :  { %v2904_v9 = vpop.f32.mrf.mxu0 }
  0xeb   :  { %v2906_v10 = vpop.f32.mrf.mxu1 }
  0xec   :  { %v2141_v11 = vpop.f32.mrf.mxu0 }
  0xed   :  { %v2197_v12 = vpop.f32.mrf.mxu1 }
  0xee   :  { %v2142_v13 = vpop.f32.mrf.mxu0 }
  0xef   :  { %v2198_v14 = vpop.f32.mrf.mxu1  ;;  %v2143_v15 = vadd.f32 %v2142_v13, %v2141_v11  ;;  %v510_v11 = vld [vmem:[%s4456_s3 + $0x418] sm:$0xff] }
  0xf0   :  { %v2199_v18 = vadd.f32 %v2198_v14, %v2197_v12  ;;  %v2144_v33 = vpop.f32.mrf.mxu0  ;;  %v410_v12 = vld [vmem:[%s4456_s3 + $0xf8] sm:$0xff]  ;;  %v509_v14 = vld [vmem:[%s4456_s3 + $0x410] sm:$0xff] }
  0xf1   :  { %v238_v17 = vadd.f32 %v2143_v15, %v2911_v16  ;;  %v2200_v43 = vpop.f32.mrf.mxu1  ;;  %v409_v15 = vld [vmem:[%s4456_s3 + $0xf0] sm:$0xff] }
  0xf2   :  { %v2145_v42 = vpop.f32.mrf.mxu0 }
  0xf3   :  { %v343_v19 = vadd.f32 %v2199_v18, %v238_v17  ;;  %v2146_v50 = vadd.f32 %v2145_v42, %v2144_v33  ;;  %v2201_v53 = vpop.f32.mrf.mxu1  ;;  %v504_v17 = vld [vmem:[%s4456_s3 + $0x3e8] sm:$0xff]  ;;  %v486_v33 = vld [vmem:[%s4456_s3 + $0x358] sm:$0xff] }
  0xf4   :  { %v2202_v61 = vadd.f32 %v2201_v53, %v2200_v43  ;;  %v404_v18 = vld [vmem:[%s4456_s3 + $0xc8] sm:$0xff]  ;;  %v474_v42 = vld [vmem:[%s4456_s3 + $0x2f8] sm:$0xff]  ;;  %v471_v43 = vld [vmem:[%s4456_s3 + $0x2e0] sm:$0xff] }
  0xf5   :  { %v2914_v20 = vmax.f32 %v343_v19, 0.0  ;;  %v243_v58 = vadd.f32 %v2146_v50, %v2911_v16  ;;  %v503_v19 = vld [vmem:[%s4456_s3 + $0x3e0] sm:$0xff]  ;;  %v456_v53 = vld [vmem:[%s4456_s3 + $0x268] sm:$0xff] }
  0xf6   :  { %v459_v50 = vld [vmem:[%s4456_s3 + $0x280] sm:$0xff] }
  0xf7   :  { %636 = vmatmul.mubr.f32.vlgmr.msra.gmra.mxu0 %v2914_v20  ;;  %713 = vmatmul.mubr.f32.vlgmr.msra.gmra.mxu1 %v2914_v20  ;;  %v348_v13 = vadd.f32 %v2202_v61, %v243_v58  ;;  %v447_v58 = vld [vmem:[%s4456_s3 + $0x220] sm:$0xff]  ;;  %v444_v61 = vld [vmem:[%s4456_s3 + $0x208] sm:$0xff] }
  0xf8   :  { %726 = vmatpush1.msra.mxu0 %v569_v21  ;;  %803 = vmatpush1.msra.mxu1 %v469_v22  ;;  %v403_v21 = vld [vmem:[%s4456_s3 + $0xc0] sm:$0xff]  ;;  %v2137_v22 = vadd.f32 %v2896_v5, %v2892_v3  ;;  %v497_v3 = vld [vmem:[%s4456_s3 + $0x3b0] sm:$0xff] }
  0xf9   :  { %727 = vmatprep.subr.mxu0 %v564_v23  ;;  %804 = vmatprep.subr.mxu1 %v464_v24  ;;  %v3059_v23 = vmax.f32 %v348_v13, 0.0  ;;  %v498_v24 = vld [vmem:[%s4456_s3 + $0x3b8] sm:$0xff]  ;;  %v397_v5 = vld [vmem:[%s4456_s3 + $0x90] sm:$0xff] }
  0xfa   :  { %728 = vmatpush1.msra.mxu0 %v563_v25  ;;  %805 = vmatpush1.msra.mxu1 %v463_v26  ;;  %v398_v25 = vld [vmem:[%s4456_s3 + $0x98] sm:$0xff]  ;;  %v228_v26 = vadd.f32 %v2137_v22, %v2911_v16  ;;  %v425_v22 = vld [vmem:[%s4456_s3 + $0x170] sm:$0xff] }
  0xfb   :  { %729 = vmatprep.subr.mxu0 %v558_v27  ;;  %806 = vmatprep.subr.mxu1 %v458_v28  ;;  %v492_v27 = vld [vmem:[%s4456_s3 + $0x388] sm:$0xff]  ;;  %v430_v13 = vld [vmem:[%s4456_s3 + $0x198] sm:$0xff] }
  0xfc   :  { %730 = vmatpush1.msra.mxu0 %v557_v29  ;;  %807 = vmatpush1.msra.mxu1 %v457_v30  ;;  %v392_v28 = vld [vmem:[%s4456_s3 + $0x68] sm:$0xff]  ;;  %v491_v29 = vld [vmem:[%s4456_s3 + $0x380] sm:$0xff] }
  0xfd   :  { %731 = vmatprep.subr.mxu0 %v552_v31  ;;  %808 = vmatprep.subr.mxu1 %v452_v32  ;;  %v391_v30 = vld [vmem:[%s4456_s3 + $0x60] sm:$0xff]  ;;  %v2193_v31 = vadd.f32 %v2898_v6, %v2894_v4  ;;  %v2140_v32 = vadd.f32 %v2904_v9, %v2900_v7  ;;  %v385_v4 = vld [vmem:[%s4456_s3 + $0x30] sm:$0xff]  ;;  %v480_v7 = vld [vmem:[%s4456_s3 + $0x328] sm:$0xff] }
  0xfe   :  { %732 = vmatpush1.msra.mxu0 %v551_v34  ;;  %809 = vmatpush1.msra.mxu1 %v451_v35  ;;  %v386_v34 = vld [vmem:[%s4456_s3 + $0x38] sm:$0xff]  ;;  %v485_v35 = vld [vmem:[%s4456_s3 + $0x350] sm:$0xff]  ;;  %v380_v9 = vld [vmem:[%s4456_s3 + $0x8] sm:$0xff] }
  0xff   :  { %733 = vmatprep.subr.mxu0 %v546_v36  ;;  %810 = vmatprep.subr.mxu1 %v446_v37  ;;  %v333_v6 = vadd.f32 %v2193_v31, %v228_v26  ;;  %v479_v36 = vld [vmem:[%s4456_s3 + $0x320] sm:$0xff]  ;;  %v233_v37 = vadd.f32 %v2140_v32, %v2911_v16  ;;  %v414_v26 = vld [vmem:[%s4456_s3 + $0x118] sm:$0xff]  ;;  %v405_v31 = vld [vmem:[%s4456_s3 + $0xd0] sm:$0xff] }
 0x100   :  { %734 = vmatpush1.msra.mxu0 %v545_v38  ;;  %811 = vmatpush1.msra.mxu1 %v445_v39  ;;  %v379_v38 = vld [vmem:[%s4456_s3] sm:$0xff] }
 0x101   :  { %735 = vmatprep.subr.mxu0 %v540_v40  ;;  %812 = vmatprep.subr.mxu1 %v440_v41  ;;  %v3119_v39 = vmax.f32 %v333_v6, 0.0  ;;  %v2196_v40 = vadd.f32 %v2906_v10, %v2902_v8  ;;  %v472_v41 = vld [vmem:[%s4456_s3 + $0x2e8] sm:$0xff]  ;;  %v473_v8 = vld [vmem:[%s4456_s3 + $0x2f0] sm:$0xff]  ;;  %v407_v32 = vld [vmem:[%s4456_s3 + $0xe0] sm:$0xff] }
 0x102   :  { %736 = vmatpush1.msra.mxu0 %v539_v44  ;;  %813 = vmatpush1.msra.mxu1 %v439_v45  ;;  %v466_v44 = vld [vmem:[%s4456_s3 + $0x2b8] sm:$0xff]  ;;  %v468_v45 = vld [vmem:[%s4456_s3 + $0x2c8] sm:$0xff] }
 0x103   :  { %737 = vmatprep.subr.mxu0 %v534_v46  ;;  %814 = vmatprep.subr.mxu1 %v434_v47  ;;  %v338_v10 = vadd.f32 %v2196_v40, %v233_v37  ;;  %v465_v46 = vld [vmem:[%s4456_s3 + $0x2b0] sm:$0xff]  ;;  %v394_v6 = vld [vmem:[%s4456_s3 + $0x78] sm:$0xff]  ;;  %v388_v37 = vld [vmem:[%s4456_s3 + $0x48] sm:$0xff] }
 0x104   :  { %738 = vmatpush1.msra.mxu0 %v533_v48  ;;  %815 = vmatpush1.msra.mxu1 %v433_v49  ;;  %v460_v48 = vld [vmem:[%s4456_s3 + $0x288] sm:$0xff]  ;;  %v462_v49 = vld [vmem:[%s4456_s3 + $0x298] sm:$0xff]  ;;  %v387_v40 = vld [vmem:[%s4456_s3 + $0x40] sm:$0xff] }
 0x105   :  { %739 = vmatprep.subr.mxu0 %v528_v51  ;;  %816 = vmatprep.subr.mxu1 %v428_v52  ;;  %v3151_v47 = vmax.f32 %v338_v10, 0.0  ;;  %v461_v51 = vld [vmem:[%s4456_s3 + $0x290] sm:$0xff]  ;;  %v454_v52 = vld [vmem:[%s4456_s3 + $0x258] sm:$0xff]  ;;  %v383_v10 = vld [vmem:[%s4456_s3 + $0x20] sm:$0xff] }
 0x106   :  { %740 = vmatpush1.msra.mxu0 %v527_v54  ;;  %817 = vmatpush1.msra.mxu1 %v427_v55  ;;  %v453_v54 = vld [vmem:[%s4456_s3 + $0x250] sm:$0xff]  ;;  %v455_v55 = vld [vmem:[%s4456_s3 + $0x260] sm:$0xff] }
 0x107   :  { %741 = vmatprep.subr.mxu0 %v522_v56  ;;  %818 = vmatprep.subr.mxu1 %v422_v57  ;;  %v448_v56 = vld [vmem:[%s4456_s3 + $0x228] sm:$0xff]  ;;  %v450_v57 = vld [vmem:[%s4456_s3 + $0x238] sm:$0xff] }
 0x108   :  { %742 = vmatpush1.msra.mxu0 %v521_v59  ;;  %819 = vmatpush1.msra.mxu1 %v421_v60  ;;  %v449_v59 = vld [vmem:[%s4456_s3 + $0x230] sm:$0xff]  ;;  %v442_v60 = vld [vmem:[%s4456_s3 + $0x1f8] sm:$0xff] }
 0x109   :  { %743 = vmatprep.subr.mxu0 %v516_v62  ;;  %820 = vmatprep.subr.mxu1 %v416_v63  ;;  %v441_v62 = vld [vmem:[%s4456_s3 + $0x1f0] sm:$0xff]  ;;  %v443_v63 = vld [vmem:[%s4456_s3 + $0x200] sm:$0xff] }
 0x10a   :  { %744 = vmatpush1.msra.mxu0 %v515_v0  ;;  %821 = vmatpush1.msra.mxu1 %v415_v1  ;;  %v436_v0 = vld [vmem:[%s4456_s3 + $0x1c8] sm:$0xff]  ;;  %v438_v1 = vld [vmem:[%s4456_s3 + $0x1d8] sm:$0xff] }
 0x10b   :  { %745 = vmatprep.subr.mxu0 %v510_v11  ;;  %822 = vmatprep.subr.mxu1 %v410_v12  ;;  %v435_v11 = vld [vmem:[%s4456_s3 + $0x1c0] sm:$0xff]  ;;  %v437_v12 = vld [vmem:[%s4456_s3 + $0x1d0] sm:$0xff] }
 0x10c   :  { %746 = vmatpush1.msra.mxu0 %v509_v14  ;;  %823 = vmatpush1.msra.mxu1 %v409_v15  ;;  %v432_v14 = vld [vmem:[%s4456_s3 + $0x1a8] sm:$0xff]  ;;  %v429_v15 = vld [vmem:[%s4456_s3 + $0x190] sm:$0xff] }
 0x10d   :  { %747 = vmatprep.subr.mxu0 %v504_v17  ;;  %824 = vmatprep.subr.mxu1 %v404_v18  ;;  %v431_v17 = vld [vmem:[%s4456_s3 + $0x1a0] sm:$0xff]  ;;  %v424_v18 = vld [vmem:[%s4456_s3 + $0x168] sm:$0xff] }
 0x10e   :  { %748 = vmatpush1.msra.mxu0 %v503_v19  ;;  %825 = vmatpush1.msra.mxu1 %v403_v21  ;;  %v426_v19 = vld [vmem:[%s4456_s3 + $0x178] sm:$0xff]  ;;  %v423_v21 = vld [vmem:[%s4456_s3 + $0x160] sm:$0xff] }
 0x10f   :  { %641 = vmatprep.mubr.f32.mxu0 %v2363_v2  ;;  %718 = vmatprep.mubr.f32.mxu1 %v2363_v2 }
 0x110   :  { %749 = vmatprep.subr.mxu0 %v498_v24  ;;  %826 = vmatprep.subr.mxu1 %v398_v25  ;;  %v420_v24 = vld [vmem:[%s4456_s3 + $0x148] sm:$0xff]  ;;  %v417_v25 = vld [vmem:[%s4456_s3 + $0x130] sm:$0xff] }
 0x111   :  { %642 = vmatmul.mubr.f32.gmra.mxu0 %v3059_v23  ;;  %719 = vmatmul.mubr.f32.gmra.mxu1 %v3059_v23 }
 0x112   :  { %750 = vmatpush1.msra.mxu0 %v497_v3  ;;  %827 = vmatpush1.msra.mxu1 %v397_v5  ;;  %v419_v3 = vld [vmem:[%s4456_s3 + $0x140] sm:$0xff]  ;;  %v412_v5 = vld [vmem:[%s4456_s3 + $0x108] sm:$0xff] }
 0x113   :  { %751 = vmatprep.subr.mxu0 %v492_v27  ;;  %828 = vmatprep.subr.mxu1 %v392_v28  ;;  %v411_v27 = vld [vmem:[%s4456_s3 + $0x100] sm:$0xff]  ;;  %v413_v28 = vld [vmem:[%s4456_s3 + $0x110] sm:$0xff] }
 0x114   :  { %752 = vmatpush1.msra.mxu0 %v491_v29  ;;  %829 = vmatpush1.msra.mxu1 %v391_v30  ;;  %v406_v29 = vld [vmem:[%s4456_s3 + $0xd8] sm:$0xff]  ;;  %v408_v30 = vld [vmem:[%s4456_s3 + $0xe8] sm:$0xff] }
 0x115   :  { %753 = vmatprep.subr.mxu0 %v486_v33  ;;  %830 = vmatprep.subr.mxu1 %v386_v34  ;;  %v400_v33 = vld [vmem:[%s4456_s3 + $0xa8] sm:$0xff]  ;;  %v402_v34 = vld [vmem:[%s4456_s3 + $0xb8] sm:$0xff] }
 0x116   :  { %754 = vmatpush1.msra.mxu0 %v485_v35  ;;  %831 = vmatpush1.msra.mxu1 %v385_v4  ;;  %v399_v35 = vld [vmem:[%s4456_s3 + $0xa0] sm:$0xff]  ;;  %v401_v4 = vld [vmem:[%s4456_s3 + $0xb0] sm:$0xff] }
 0x117   :  { %755 = vmatprep.subr.mxu0 %v480_v7  ;;  %832 = vmatprep.subr.mxu1 %v380_v9  ;;  %v396_v7 = vld [vmem:[%s4456_s3 + $0x88] sm:$0xff]  ;;  %v393_v9 = vld [vmem:[%s4456_s3 + $0x70] sm:$0xff] }
 0x118   :  { %756 = vmatpush1.msra.mxu0 %v479_v36  ;;  %789 = vmatprep.mubr.f32.mxu0 %v2363_v2  ;;  %v395_v36 = vld [vmem:[%s4456_s3 + $0x80] sm:$0xff] }
 0x119   :  { %833 = vmatpush1.msra.mxu1 %v379_v38  ;;  %866 = vmatprep.mubr.f32.mxu1 %v2363_v2  ;;  %v390_v38 = vld [vmem:[%s4456_s3 + $0x58] sm:$0xff] }
 0x11a   :  { %790 = vmatmul.mubr.f32.vlgmr.msra.gmra.mxu0 %v2914_v20  ;;  %867 = vmatmul.mubr.f32.vlgmr.msra.gmra.mxu1 %v3119_v39  ;;  %v467_v20 = vld [vmem:[%s4456_s3 + $0x2c0] sm:$0xff] }
 0x11b   :  { %879 = vmatprep.subr.mxu0 %v472_v41  ;;  %956 = vmatprep.subr.mxu1 %v474_v42  ;;  %v389_v41 = vld [vmem:[%s4456_s3 + $0x50] sm:$0xff]  ;;  %v382_v42 = vld [vmem:[%s4456_s3 + $0x18] sm:$0xff] }
 0x11c   :  { %880 = vmatpush1.msra.mxu0 %v471_v43  ;;  %957 = vmatpush1.msra.mxu1 %v473_v8  ;;  %v384_v43 = vld [vmem:[%s4456_s3 + $0x28] sm:$0xff]  ;;  %v381_v8 = vld [vmem:[%s4456_s3 + $0x10] sm:$0xff] }
 0x11d   :  { %881 = vmatprep.subr.mxu0 %v466_v44  ;;  %958 = vmatprep.subr.mxu1 %v468_v45  ;;  %v1124_v44 = vld [vmem:[%s4456_s3 + $0x8d8] sm:$0xff]  ;;  %v1126_v45 = vld [vmem:[%s4456_s3 + $0x8e8] sm:$0xff] }
 0x11e   :  { %795 = vmatprep.mubr.f32.mxu0 %v2363_v2  ;;  %872 = vmatprep.mubr.f32.mxu1 %v2363_v2 }
 0x11f   :  { %882 = vmatpush1.msra.mxu0 %v465_v46  ;;  %959 = vmatpush1.msra.mxu1 %v467_v20  ;;  %v1123_v46 = vld [vmem:[%s4456_s3 + $0x8d0] sm:$0xff]  ;;  %v1125_v20 = vld [vmem:[%s4456_s3 + $0x8e0] sm:$0xff] }
 0x120   :  { %796 = vmatmul.mubr.f32.gmra.mxu0 %v3059_v23  ;;  %873 = vmatmul.mubr.f32.gmra.mxu1 %v3151_v47  ;;  %v418_v23 = vld [vmem:[%s4456_s3 + $0x138] sm:$0xff] }
 0x121   :  { %883 = vmatprep.subr.mxu0 %v460_v48  ;;  %960 = vmatprep.subr.mxu1 %v462_v49  ;;  %v1118_v48 = vld [vmem:[%s4456_s3 + $0x8a8] sm:$0xff]  ;;  %v1120_v49 = vld [vmem:[%s4456_s3 + $0x8b8] sm:$0xff] }
 0x122   :  { %884 = vmatpush1.msra.mxu0 %v459_v50  ;;  %961 = vmatpush1.msra.mxu1 %v461_v51  ;;  %v1117_v50 = vld [vmem:[%s4456_s3 + $0x8a0] sm:$0xff]  ;;  %v1112_v51 = vld [vmem:[%s4456_s3 + $0x878] sm:$0xff] }
 0x123   :  { %885 = vmatprep.subr.mxu0 %v454_v52  ;;  %962 = vmatprep.subr.mxu1 %v456_v53  ;;  %v1114_v52 = vld [vmem:[%s4456_s3 + $0x888] sm:$0xff]  ;;  %v1111_v53 = vld [vmem:[%s4456_s3 + $0x870] sm:$0xff] }
 0x124   :  { %886 = vmatpush1.msra.mxu0 %v453_v54  ;;  %963 = vmatpush1.msra.mxu1 %v455_v55  ;;  %v1113_v54 = vld [vmem:[%s4456_s3 + $0x880] sm:$0xff]  ;;  %v1106_v55 = vld [vmem:[%s4456_s3 + $0x848] sm:$0xff] }
 0x125   :  { %887 = vmatprep.subr.mxu0 %v448_v56  ;;  %964 = vmatprep.subr.mxu1 %v450_v57  ;;  %v1108_v56 = vld [vmem:[%s4456_s3 + $0x858] sm:$0xff]  ;;  %v1105_v57 = vld [vmem:[%s4456_s3 + $0x840] sm:$0xff] }
 0x126   :  { %888 = vmatpush1.msra.mxu0 %v447_v58  ;;  %965 = vmatpush1.msra.mxu1 %v449_v59  ;;  %v1107_v58 = vld [vmem:[%s4456_s3 + $0x850] sm:$0xff]  ;;  %v1102_v59 = vld [vmem:[%s4456_s3 + $0x828] sm:$0xff] }
 0x127   :  { %889 = vmatprep.subr.mxu0 %v442_v60  ;;  %966 = vmatprep.subr.mxu1 %v444_v61  ;;  %v1099_v60 = vld [vmem:[%s4456_s3 + $0x810] sm:$0xff]  ;;  %v1101_v61 = vld [vmem:[%s4456_s3 + $0x820] sm:$0xff] }
 0x128   :  { %890 = vmatpush1.msra.mxu0 %v441_v62  ;;  %967 = vmatpush1.msra.mxu1 %v443_v63  ;;  %v1094_v62 = vld [vmem:[%s4456_s3 + $0x7e8] sm:$0xff]  ;;  %v1096_v63 = vld [vmem:[%s4456_s3 + $0x7f8] sm:$0xff] }
 0x129   :  { %891 = vmatprep.subr.mxu0 %v436_v0  ;;  %968 = vmatprep.subr.mxu1 %v438_v1  ;;  %v1093_v0 = vld [vmem:[%s4456_s3 + $0x7e0] sm:$0xff]  ;;  %v1095_v1 = vld [vmem:[%s4456_s3 + $0x7f0] sm:$0xff] }
 0x12a   :  { %892 = vmatpush1.msra.mxu0 %v435_v11  ;;  %969 = vmatpush1.msra.mxu1 %v437_v12  ;;  %v2147_v11 = vpop.f32.mrf.mxu0  ;;  %v1088_v12 = vld [vmem:[%s4456_s3 + $0x7b8] sm:$0xff] }
 0x12b   :  { %893 = vmatprep.subr.mxu0 %v430_v13  ;;  %970 = vmatprep.subr.mxu1 %v432_v14  ;;  %v1090_v13 = vld [vmem:[%s4456_s3 + $0x7c8] sm:$0xff]  ;;  %v1087_v14 = vld [vmem:[%s4456_s3 + $0x7b0] sm:$0xff] }
 0x12c   :  { %894 = vmatpush1.msra.mxu0 %v429_v15  ;;  %971 = vmatpush1.msra.mxu1 %v431_v17  ;;  %v1089_v15 = vld [vmem:[%s4456_s3 + $0x7c0] sm:$0xff]  ;;  %v1082_v17 = vld [vmem:[%s4456_s3 + $0x788] sm:$0xff] }
 0x12d   :  { %895 = vmatprep.subr.mxu0 %v424_v18  ;;  %972 = vmatprep.subr.mxu1 %v426_v19  ;;  %v1084_v18 = vld [vmem:[%s4456_s3 + $0x798] sm:$0xff]  ;;  %v1081_v19 = vld [vmem:[%s4456_s3 + $0x780] sm:$0xff] }
 0x12e   :  { %896 = vmatpush1.msra.mxu0 %v423_v21  ;;  %973 = vmatpush1.msra.mxu1 %v425_v22  ;;  %v1083_v21 = vld [vmem:[%s4456_s3 + $0x790] sm:$0xff]  ;;  %v2148_v22 = vpop.f32.mrf.mxu0 }
 0x12f   :  { %897 = vmatprep.subr.mxu0 %v418_v23  ;;  %974 = vmatprep.subr.mxu1 %v420_v24  ;;  %v2203_v23 = vpop.f32.mrf.mxu1  ;;  %v1076_v24 = vld [vmem:[%s4456_s3 + $0x758] sm:$0xff] }
 0x130   :  { %898 = vmatpush1.msra.mxu0 %v417_v25  ;;  %975 = vmatpush1.msra.mxu1 %v419_v3  ;;  %v1078_v25 = vld [vmem:[%s4456_s3 + $0x768] sm:$0xff]  ;;  %v1075_v3 = vld [vmem:[%s4456_s3 + $0x750] sm:$0xff] }
 0x131   :  { %899 = vmatprep.subr.mxu0 %v412_v5  ;;  %976 = vmatprep.subr.mxu1 %v414_v26  ;;  %v1077_v5 = vld [vmem:[%s4456_s3 + $0x760] sm:$0xff]  ;;  %v1070_v26 = vld [vmem:[%s4456_s3 + $0x728] sm:$0xff] }
 0x132   :  { %900 = vmatpush1.msra.mxu0 %v411_v27  ;;  %977 = vmatpush1.msra.mxu1 %v413_v28  ;;  %v1072_v27 = vld [vmem:[%s4456_s3 + $0x738] sm:$0xff]  ;;  %v1069_v28 = vld [vmem:[%s4456_s3 + $0x720] sm:$0xff] }
 0x133   :  { %901 = vmatprep.subr.mxu0 %v406_v29  ;;  %978 = vmatprep.subr.mxu1 %v408_v30  ;;  %v1071_v29 = vld [vmem:[%s4456_s3 + $0x730] sm:$0xff]  ;;  %v2204_v30 = vpop.f32.mrf.mxu1 }
 0x134   :  { %902 = vmatpush1.msra.mxu0 %v405_v31  ;;  %979 = vmatpush1.msra.mxu1 %v407_v32  ;;  %v2150_v31 = vpop.f32.mrf.mxu0  ;;  %v1064_v32 = vld [vmem:[%s4456_s3 + $0x6f8] sm:$0xff] }
 0x135   :  { %903 = vmatprep.subr.mxu0 %v400_v33  ;;  %980 = vmatprep.subr.mxu1 %v402_v34  ;;  %v1066_v33 = vld [vmem:[%s4456_s3 + $0x708] sm:$0xff]  ;;  %v2149_v34 = vadd.f32 %v2148_v22, %v2147_v11  ;;  %v1109_v22 = vld [vmem:[%s4456_s3 + $0x860] sm:$0xff] }
 0x136   :  { %904 = vmatpush1.msra.mxu0 %v399_v35  ;;  %981 = vmatpush1.msra.mxu1 %v401_v4  ;;  %v1063_v35 = vld [vmem:[%s4456_s3 + $0x6f0] sm:$0xff]  ;;  %v1065_v4 = vld [vmem:[%s4456_s3 + $0x700] sm:$0xff] }
 0x137   :  { %905 = vmatprep.subr.mxu0 %v394_v6  ;;  %982 = vmatprep.subr.mxu1 %v396_v7  ;;  %v1058_v6 = vld [vmem:[%s4456_s3 + $0x6c8] sm:$0xff]  ;;  %v1060_v7 = vld [vmem:[%s4456_s3 + $0x6d8] sm:$0xff] }
 0x138   :  { %906 = vmatpush1.msra.mxu0 %v393_v9  ;;  %983 = vmatpush1.msra.mxu1 %v395_v36  ;;  %v1057_v9 = vld [vmem:[%s4456_s3 + $0x6c0] sm:$0xff]  ;;  %v1059_v36 = vld [vmem:[%s4456_s3 + $0x6d0] sm:$0xff] }
 0x139   :  { %907 = vmatprep.subr.mxu0 %v388_v37  ;;  %984 = vmatprep.subr.mxu1 %v390_v38  ;;  %v2151_v37 = vpop.f32.mrf.mxu0  ;;  %v2206_v38 = vpop.f32.mrf.mxu1 }
 0x13a   :  { %908 = vmatpush1.msra.mxu0 %v387_v40  ;;  %985 = vmatpush1.msra.mxu1 %v389_v41  ;;  %v248_v40 = vadd.f32 %v2149_v34, %v2911_v16  ;;  %v2205_v41 = vadd.f32 %v2204_v30, %v2203_v23  ;;  %v1444_v23 = vld [vmem:[%s4456_s3 + $0xb40] sm:$0xff]  ;;  %v1426_v34 = vld [vmem:[%s4456_s3 + $0xab0] sm:$0xff] }
 0x13b   :  { %909 = vmatprep.subr.mxu0 %v382_v42  ;;  %986 = vmatprep.subr.mxu1 %v384_v43  ;;  %v1052_v42 = vld [vmem:[%s4456_s3 + $0x698] sm:$0xff]  ;;  %v1054_v43 = vld [vmem:[%s4456_s3 + $0x6a8] sm:$0xff]  ;;  %v2153_v30 = vpop.f32.mrf.mxu0 }
 0x13c   :  { %910 = vmatpush1.msra.mxu0 %v381_v8  ;;  %943 = vmatprep.mubr.f32.mxu0 %v2363_v2  ;;  %v1051_v8 = vld [vmem:[%s4456_s3 + $0x690] sm:$0xff] }
 0x13d   :  { %987 = vmatpush1.msra.mxu1 %v383_v10  ;;  %1020 = vmatprep.mubr.f32.mxu1 %v2363_v2  ;;  %v1053_v10 = vld [vmem:[%s4456_s3 + $0x6a0] sm:$0xff] }
 0x13e   :  { %944 = vmatmul.mubr.f32.vlgmr.msra.gmra.mxu0 %v3119_v39  ;;  %1021 = vmatmul.mubr.f32.vlgmr.msra.gmra.mxu1 %v3119_v39  ;;  %v1119_v39 = vld [vmem:[%s4456_s3 + $0x8b0] sm:$0xff] }
 0x13f   :  { %1129 = vmatprep.subr.mxu0 %v1124_v44  ;;  %1206 = vmatprep.subr.mxu1 %v1126_v45  ;;  %v1046_v44 = vld [vmem:[%s4456_s3 + $0x668] sm:$0xff]  ;;  %v1048_v45 = vld [vmem:[%s4456_s3 + $0x678] sm:$0xff] }
 0x140   :  { %1130 = vmatpush1.msra.mxu0 %v1123_v46  ;;  %1207 = vmatpush1.msra.mxu1 %v1125_v20  ;;  %v2152_v46 = vadd.f32 %v2151_v37, %v2150_v31  ;;  %v1045_v20 = vld [vmem:[%s4456_s3 + $0x660] sm:$0xff]  ;;  %v1092_v31 = vld [vmem:[%s4456_s3 + $0x7d8] sm:$0xff] }
 0x141   :  { %1131 = vmatprep.subr.mxu0 %v1118_v48  ;;  %1208 = vmatprep.subr.mxu1 %v1120_v49  ;;  %v1047_v48 = vld [vmem:[%s4456_s3 + $0x670] sm:$0xff]  ;;  %v2207_v49 = vpop.f32.mrf.mxu1  ;;  %v1080_v37 = vld [vmem:[%s4456_s3 + $0x778] sm:$0xff] }
 0x142   :  { %949 = vmatprep.mubr.f32.mxu0 %v2363_v2  ;;  %1026 = vmatprep.mubr.f32.mxu1 %v2363_v2 }
 0x143   :  { %1132 = vmatpush1.msra.mxu0 %v1117_v50  ;;  %1209 = vmatpush1.msra.mxu1 %v1119_v39  ;;  %v353_v50 = vadd.f32 %v2205_v41, %v248_v40  ;;  %v1040_v39 = vld [vmem:[%s4456_s3 + $0x638] sm:$0xff]  ;;  %v1079_v40 = vld [vmem:[%s4456_s3 + $0x770] sm:$0xff] }
 0x144   :  { %950 = vmatmul.mubr.f32.gmra.mxu0 %v3151_v47  ;;  %1027 = vmatmul.mubr.f32.gmra.mxu1 %v3151_v47  ;;  %v1100_v47 = vld [vmem:[%s4456_s3 + $0x818] sm:$0xff]  ;;  %v1414_v41 = vld [vmem:[%s4456_s3 + $0xa50] sm:$0xff] }
 0x145   :  { %1133 = vmatprep.subr.mxu0 %v1112_v51  ;;  %1210 = vmatprep.subr.mxu1 %v1114_v52  ;;  %v1042_v51 = vld [vmem:[%s4456_s3 + $0x648] sm:$0xff]  ;;  %v1039_v52 = vld [vmem:[%s4456_s3 + $0x630] sm:$0xff] }
 0x146   :  { %1134 = vmatpush1.msra.mxu0 %v1111_v53  ;;  %1211 = vmatpush1.msra.mxu1 %v1113_v54  ;;  %v1041_v53 = vld [vmem:[%s4456_s3 + $0x640] sm:$0xff]  ;;  %v253_v54 = vadd.f32 %v2152_v46, %v2911_v16  ;;  %v1035_v16 = vld [vmem:[%s4456_s3 + $0x610] sm:$0xff]  ;;  %v1068_v46 = vld [vmem:[%s4456_s3 + $0x718] sm:$0xff] }
 0x147   :  { %1135 = vmatprep.subr.mxu0 %v1106_v55  ;;  %1212 = vmatprep.subr.mxu1 %v1108_v56  ;;  %v2208_v55 = vadd.f32 %v2207_v49, %v2206_v38  ;;  %v1034_v56 = vld [vmem:[%s4456_s3 + $0x608] sm:$0xff]  ;;  %v1415_v38 = vld [vmem:[%s4456_s3 + $0xa58] sm:$0xff]  ;;  %v1067_v49 = vld [vmem:[%s4456_s3 + $0x710] sm:$0xff] }
 0x148   :  { %1136 = vmatpush1.msra.mxu0 %v1105_v57  ;;  %1213 = vmatpush1.msra.mxu1 %v1107_v58  ;;  %v1036_v57 = vld [vmem:[%s4456_s3 + $0x618] sm:$0xff]  ;;  %v1033_v58 = vld [vmem:[%s4456_s3 + $0x600] sm:$0xff] }
 0x149   :  { %1137 = vmatprep.subr.mxu0 %v1100_v47  ;;  %1214 = vmatprep.subr.mxu1 %v1102_v59  ;;  %v3524_v47 = vmax.f32 %v353_v50, 0.0  ;;  %v358_v59 = vadd.f32 %v2208_v55, %v253_v54  ;;  %v1402_v50 = vld [vmem:[%s4456_s3 + $0x9f0] sm:$0xff] }
 0x14a   :  { %1138 = vmatpush1.msra.mxu0 %v1099_v60  ;;  %1215 = vmatpush1.msra.mxu1 %v1101_v61  ;;  %v1128_v60 = vld [vmem:[%s4456_s3 + $0x8f8] sm:$0xff] }
 0x14b   :  { %1139 = vmatprep.subr.mxu0 %v1094_v62  ;;  %1216 = vmatprep.subr.mxu1 %v1096_v63  ;;  %v1463_v61 = vld [vmem:[%s4456_s3 + $0xbd8] sm:$0xff]  ;;  %v1127_v62 = vld [vmem:[%s4456_s3 + $0x8f0] sm:$0xff]  ;;  %v3551_v11 = vmax.f32 %v358_v59, 0.0 }
 0x14c   :  { %1140 = vmatpush1.msra.mxu0 %v1093_v0  ;;  %1217 = vmatpush1.msra.mxu1 %v1095_v1  ;;  %v1462_v63 = vld [vmem:[%s4456_s3 + $0xbd0] sm:$0xff]  ;;  %v1122_v0 = vld [vmem:[%s4456_s3 + $0x8c8] sm:$0xff] }
 0x14d   :  { %1141 = vmatprep.subr.mxu0 %v1088_v12  ;;  %1218 = vmatprep.subr.mxu1 %v1090_v13  ;;  %v1457_v1 = vld [vmem:[%s4456_s3 + $0xba8] sm:$0xff]  ;;  %v1121_v12 = vld [vmem:[%s4456_s3 + $0x8c0] sm:$0xff] }
 0x14e   :  { %1142 = vmatpush1.msra.mxu0 %v1087_v14  ;;  %1219 = vmatpush1.msra.mxu1 %v1089_v15  ;;  %v1456_v13 = vld [vmem:[%s4456_s3 + $0xba0] sm:$0xff]  ;;  %v1116_v14 = vld [vmem:[%s4456_s3 + $0x898] sm:$0xff] }
 0x14f   :  { %1143 = vmatprep.subr.mxu0 %v1082_v17  ;;  %1220 = vmatprep.subr.mxu1 %v1084_v18  ;;  %v1451_v15 = vld [vmem:[%s4456_s3 + $0xb78] sm:$0xff]  ;;  %v1115_v17 = vld [vmem:[%s4456_s3 + $0x890] sm:$0xff] }
 0x150   :  { %1144 = vmatpush1.msra.mxu0 %v1081_v19  ;;  %1221 = vmatpush1.msra.mxu1 %v1083_v21  ;;  %v1450_v18 = vld [vmem:[%s4456_s3 + $0xb70] sm:$0xff]  ;;  %v1110_v19 = vld [vmem:[%s4456_s3 + $0x868] sm:$0xff] }
 0x151   :  { %1145 = vmatprep.subr.mxu0 %v1076_v24  ;;  %1222 = vmatprep.subr.mxu1 %v1078_v25  ;;  %v1445_v21 = vld [vmem:[%s4456_s3 + $0xb48] sm:$0xff]  ;;  %v1104_v24 = vld [vmem:[%s4456_s3 + $0x838] sm:$0xff] }
 0x152   :  { %1146 = vmatpush1.msra.mxu0 %v1075_v3  ;;  %1223 = vmatpush1.msra.mxu1 %v1077_v5  ;;  %v1439_v25 = vld [vmem:[%s4456_s3 + $0xb18] sm:$0xff]  ;;  %v1103_v3 = vld [vmem:[%s4456_s3 + $0x830] sm:$0xff] }
 0x153   :  { %1147 = vmatprep.subr.mxu0 %v1070_v26  ;;  %1224 = vmatprep.subr.mxu1 %v1072_v27  ;;  %v1438_v5 = vld [vmem:[%s4456_s3 + $0xb10] sm:$0xff]  ;;  %v1098_v26 = vld [vmem:[%s4456_s3 + $0x808] sm:$0xff] }
 0x154   :  { %1148 = vmatpush1.msra.mxu0 %v1069_v28  ;;  %1225 = vmatpush1.msra.mxu1 %v1071_v29  ;;  %v1433_v27 = vld [vmem:[%s4456_s3 + $0xae8] sm:$0xff]  ;;  %v1097_v28 = vld [vmem:[%s4456_s3 + $0x800] sm:$0xff] }
 0x155   :  { %1149 = vmatprep.subr.mxu0 %v1064_v32  ;;  %1226 = vmatprep.subr.mxu1 %v1066_v33  ;;  %v1432_v29 = vld [vmem:[%s4456_s3 + $0xae0] sm:$0xff]  ;;  %v1427_v32 = vld [vmem:[%s4456_s3 + $0xab8] sm:$0xff]  ;;  %v1091_v33 = vld [vmem:[%s4456_s3 + $0x7d0] sm:$0xff] }
 0x156   :  { %1150 = vmatpush1.msra.mxu0 %v1063_v35  ;;  %1227 = vmatpush1.msra.mxu1 %v1065_v4  ;;  %v1086_v35 = vld [vmem:[%s4456_s3 + $0x7a8] sm:$0xff] }
 0x157   :  { %1151 = vmatprep.subr.mxu0 %v1058_v6  ;;  %1228 = vmatprep.subr.mxu1 %v1060_v7  ;;  %v1421_v4 = vld [vmem:[%s4456_s3 + $0xa88] sm:$0xff]  ;;  %v1085_v6 = vld [vmem:[%s4456_s3 + $0x7a0] sm:$0xff] }
 0x158   :  { %1152 = vmatpush1.msra.mxu0 %v1057_v9  ;;  %1229 = vmatpush1.msra.mxu1 %v1059_v36  ;;  %v1420_v7 = vld [vmem:[%s4456_s3 + $0xa80] sm:$0xff]  ;;  %v2154_v9 = vpop.f32.mrf.mxu0  ;;  %v2209_v36 = vpop.f32.mrf.mxu1 }
 0x159   :  { %1153 = vmatprep.subr.mxu0 %v1052_v42  ;;  %1230 = vmatprep.subr.mxu1 %v1054_v43  ;;  %v1074_v42 = vld [vmem:[%s4456_s3 + $0x748] sm:$0xff] }
 0x15a   :  { %1154 = vmatpush1.msra.mxu0 %v1051_v8  ;;  %1231 = vmatpush1.msra.mxu1 %v1053_v10  ;;  %v1409_v43 = vld [vmem:[%s4456_s3 + $0xa28] sm:$0xff]  ;;  %v1073_v8 = vld [vmem:[%s4456_s3 + $0x740] sm:$0xff] }
 0x15b   :  { %1155 = vmatprep.subr.mxu0 %v1046_v44  ;;  %1232 = vmatprep.subr.mxu1 %v1048_v45  ;;  %v1408_v10 = vld [vmem:[%s4456_s3 + $0xa20] sm:$0xff]  ;;  %v2156_v44 = vpop.f32.mrf.mxu0  ;;  %v2210_v45 = vpop.f32.mrf.mxu1 }
 0x15c   :  { %1156 = vmatpush1.msra.mxu0 %v1045_v20  ;;  %1233 = vmatpush1.msra.mxu1 %v1047_v48  ;;  %v1403_v20 = vld [vmem:[%s4456_s3 + $0x9f8] sm:$0xff]  ;;  %v2155_v48 = vadd.f32 %v2154_v9, %v2153_v30  ;;  %v2211_v59 = vadd.f32 %v2210_v45, %v2209_v36  ;;  %v1466_v30 = vld [vmem:[%s4456_s3 + $0xbf0] sm:$0xff]  ;;  %v1449_v36 = vld [vmem:[%s4456_s3 + $0xb68] sm:$0xff] }
 0x15d   :  { %1157 = vmatprep.subr.mxu0 %v1040_v39  ;;  %1234 = vmatprep.subr.mxu1 %v1042_v51  ;;  %v1062_v39 = vld [vmem:[%s4456_s3 + $0x6e8] sm:$0xff]  ;;  %v2157_v54 = vpop.f32.mrf.mxu0  ;;  %v2212_v55 = vpop.f32.mrf.mxu1  ;;  %v1447_v9 = vld [vmem:[%s4456_s3 + $0xb58] sm:$0xff] }
 0x15e   :  { %1158 = vmatpush1.msra.mxu0 %v1039_v52  ;;  %1235 = vmatpush1.msra.mxu1 %v1041_v53  ;;  %v1397_v51 = vld [vmem:[%s4456_s3 + $0x9c8] sm:$0xff]  ;;  %v1061_v52 = vld [vmem:[%s4456_s3 + $0x6e0] sm:$0xff] }
 0x15f   :  { %1159 = vmatprep.subr.mxu0 %v1034_v56  ;;  %1236 = vmatprep.subr.mxu1 %v1036_v57  ;;  %v1396_v53 = vld [vmem:[%s4456_s3 + $0x9c0] sm:$0xff]  ;;  %v1429_v45 = vld [vmem:[%s4456_s3 + $0xac8] sm:$0xff] }
 0x160   :  { %1160 = vmatpush1.msra.mxu0 %v1033_v58  ;;  %1193 = vmatprep.mubr.f32.mxu0 %v2363_v2  ;;  %v2362_v56 = vld [vmem:[%s4457_s2] ss:$0 sm:$0xff]  ;;  %v1056_v58 = vld [vmem:[%s4456_s3 + $0x6b8] sm:$0xff] }
 0x161   :  { %1237 = vmatpush1.msra.mxu1 %v1035_v16  ;;  %1270 = vmatprep.mubr.f32.mxu1 %v2363_v2  ;;  %v258_v57 = vadd.f32 %v2362_v56, %v2155_v48  ;;  %v1391_v16 = vld [vmem:[%s4456_s3 + $0x998] sm:$0xff]  ;;  %v1430_v48 = vld [vmem:[%s4456_s3 + $0xad0] sm:$0xff] }
 0x162   :  { %1194 = vmatmul.mubr.f32.vlgmr.msra.gmra.mxu0 %v3524_v47  ;;  %1271 = vmatmul.mubr.f32.vlgmr.msra.gmra.mxu1 %v3524_v47 }
 0x163   :  { %1283 = vmatprep.subr.mxu0 %v1128_v60  ;;  %1468 = vmatprep.subr.mxu1 %v1463_v61  ;;  %v1055_v60 = vld [vmem:[%s4456_s3 + $0x6b0] sm:$0xff] }
 0x164   :  { %1284 = vmatpush1.msra.mxu0 %v1127_v62  ;;  %1469 = vmatpush1.msra.mxu1 %v1462_v63  ;;  %v1390_v61 = vld [vmem:[%s4456_s3 + $0x990] sm:$0xff]  ;;  %v1050_v62 = vld [vmem:[%s4456_s3 + $0x688] sm:$0xff] }
 0x165   :  { %1285 = vmatprep.subr.mxu0 %v1122_v0  ;;  %1470 = vmatprep.subr.mxu1 %v1457_v1  ;;  %v1385_v63 = vld [vmem:[%s4456_s3 + $0x968] sm:$0xff]  ;;  %v2158_v0 = vadd.f32 %v2157_v54, %v2156_v44  ;;  %v1049_v1 = vld [vmem:[%s4456_s3 + $0x680] sm:$0xff] }
 0x166   :  { %1199 = vmatprep.mubr.f32.mxu0 %v2363_v2  ;;  %1276 = vmatprep.mubr.f32.mxu1 %v2363_v2  ;;  %v1436_v44 = vld [vmem:[%s4456_s3 + $0xb00] sm:$0xff] }
 0x167   :  { %1286 = vmatpush1.msra.mxu0 %v1121_v12  ;;  %1471 = vmatpush1.msra.mxu1 %v1456_v13  ;;  %v1384_v12 = vld [vmem:[%s4456_s3 + $0x960] sm:$0xff]  ;;  %v2213_v13 = vpop.f32.mrf.mxu1 }
 0x168   :  { %1200 = vmatmul.mubr.f32.gmra.mxu0 %v3551_v11  ;;  %1277 = vmatmul.mubr.f32.gmra.mxu1 %v3551_v11  ;;  %v1416_v54 = vld [vmem:[%s4456_s3 + $0xa60] sm:$0xff] }
 0x169   :  { %1287 = vmatprep.subr.mxu0 %v1116_v14  ;;  %1472 = vmatprep.subr.mxu1 %v1451_v15  ;;  %v363_v14 = vadd.f32 %v2211_v59, %v258_v57  ;;  %v1044_v15 = vld [vmem:[%s4456_s3 + $0x658] sm:$0xff]  ;;  %v1413_v57 = vld [vmem:[%s4456_s3 + $0xa48] sm:$0xff] }
 0x16a   :  { %1288 = vmatpush1.msra.mxu0 %v1115_v17  ;;  %1473 = vmatpush1.msra.mxu1 %v1450_v18  ;;  %v1379_v17 = vld [vmem:[%s4456_s3 + $0x938] sm:$0xff]  ;;  %v1043_v18 = vld [vmem:[%s4456_s3 + $0x650] sm:$0xff]  ;;  %v1405_v59 = vld [vmem:[%s4456_s3 + $0xa08] sm:$0xff] }
 0x16b   :  { %1289 = vmatprep.subr.mxu0 %v1110_v19  ;;  %1474 = vmatprep.subr.mxu1 %v1445_v21  ;;  %v1378_v19 = vld [vmem:[%s4456_s3 + $0x930] sm:$0xff]  ;;  %v263_v21 = vadd.f32 %v2362_v56, %v2158_v0  ;;  %v1411_v56 = vld [vmem:[%s4456_s3 + $0xa38] sm:$0xff]  ;;  %v1401_v0 = vld [vmem:[%s4456_s3 + $0x9e8] sm:$0xff] }
 0x16c   :  { %1290 = vmatpush1.msra.mxu0 %v1109_v22  ;;  %1475 = vmatpush1.msra.mxu1 %v1444_v23  ;;  %v2214_v22 = vadd.f32 %v2213_v13, %v2212_v55  ;;  %v1038_v23 = vld [vmem:[%s4456_s3 + $0x628] sm:$0xff]  ;;  %v1418_v55 = vld [vmem:[%s4456_s3 + $0xa70] sm:$0xff] }
 0x16d   :  { %1291 = vmatprep.subr.mxu0 %v1104_v24  ;;  %1476 = vmatprep.subr.mxu1 %v1439_v25  ;;  %v1373_v24 = vld [vmem:[%s4456_s3 + $0x908] sm:$0xff]  ;;  %v1037_v25 = vld [vmem:[%s4456_s3 + $0x620] sm:$0xff] }
 0x16e   :  { %1292 = vmatpush1.msra.mxu0 %v1103_v3  ;;  %1477 = vmatpush1.msra.mxu1 %v1438_v5  ;;  %v3731_v3 = vmax.f32 %v363_v14, 0.0  ;;  %v1372_v5 = vld [vmem:[%s4456_s3 + $0x900] sm:$0xff]  ;;  %v1393_v13 = vld [vmem:[%s4456_s3 + $0x9a8] sm:$0xff]  ;;  %v1395_v14 = vld [vmem:[%s4456_s3 + $0x9b8] sm:$0xff] }
 0x16f   :  { %1293 = vmatprep.subr.mxu0 %v1098_v26  ;;  %1478 = vmatprep.subr.mxu1 %v1433_v27  ;;  %v368_v26 = vadd.f32 %v2214_v22, %v263_v21  ;;  %v1465_v27 = vld [vmem:[%s4456_s3 + $0xbe8] sm:$0xff]  ;;  %v1386_v21 = vld [vmem:[%s4456_s3 + $0x970] sm:$0xff]  ;;  %v1388_v22 = vld [vmem:[%s4456_s3 + $0x980] sm:$0xff] }
 0x170   :  { %1294 = vmatpush1.msra.mxu0 %v1097_v28  ;;  %1479 = vmatpush1.msra.mxu1 %v1432_v29  ;;  %v1467_v28 = vld [vmem:[%s4456_s3 + $0xbf8] sm:$0xff]  ;;  %v1464_v29 = vld [vmem:[%s4456_s3 + $0xbe0] sm:$0xff] }
 0x171   :  { %1295 = vmatprep.subr.mxu0 %v1092_v31  ;;  %1480 = vmatprep.subr.mxu1 %v1427_v32  ;;  %v1459_v31 = vld [vmem:[%s4456_s3 + $0xbb8] sm:$0xff]  ;;  %v1461_v32 = vld [vmem:[%s4456_s3 + $0xbc8] sm:$0xff] }
 0x172   :  { %1296 = vmatpush1.msra.mxu0 %v1091_v33  ;;  %1481 = vmatpush1.msra.mxu1 %v1426_v34  ;;  %v3758_v33 = vmax.f32 %v368_v26, 0.0  ;;  %v1460_v34 = vld [vmem:[%s4456_s3 + $0xbc0] sm:$0xff]  ;;  %v1375_v26 = vld [vmem:[%s4456_s3 + $0x918] sm:$0xff] }
 0x173   :  { %1297 = vmatprep.subr.mxu0 %v1086_v35  ;;  %1482 = vmatprep.subr.mxu1 %v1421_v4  ;;  %v1453_v35 = vld [vmem:[%s4456_s3 + $0xb88] sm:$0xff]  ;;  %v1455_v4 = vld [vmem:[%s4456_s3 + $0xb98] sm:$0xff] }
 0x174   :  { %1298 = vmatpush1.msra.mxu0 %v1085_v6  ;;  %1483 = vmatpush1.msra.mxu1 %v1420_v7  ;;  %v1452_v6 = vld [vmem:[%s4456_s3 + $0xb80] sm:$0xff]  ;;  %v1454_v7 = vld [vmem:[%s4456_s3 + $0xb90] sm:$0xff] }
 0x175   :  { %1299 = vmatprep.subr.mxu0 %v1080_v37  ;;  %1484 = vmatprep.subr.mxu1 %v1415_v38  ;;  %v1446_v37 = vld [vmem:[%s4456_s3 + $0xb50] sm:$0xff]  ;;  %v1441_v38 = vld [vmem:[%s4456_s3 + $0xb28] sm:$0xff] }
 0x176   :  { %1300 = vmatpush1.msra.mxu0 %v1079_v40  ;;  %1485 = vmatpush1.msra.mxu1 %v1414_v41  ;;  %v1443_v40 = vld [vmem:[%s4456_s3 + $0xb38] sm:$0xff]  ;;  %v1440_v41 = vld [vmem:[%s4456_s3 + $0xb20] sm:$0xff] }
 0x177   :  { %1301 = vmatprep.subr.mxu0 %v1074_v42  ;;  %1486 = vmatprep.subr.mxu1 %v1409_v43  ;;  %v1442_v42 = vld [vmem:[%s4456_s3 + $0xb30] sm:$0xff]  ;;  %v1435_v43 = vld [vmem:[%s4456_s3 + $0xaf8] sm:$0xff] }
 0x178   :  { %1302 = vmatpush1.msra.mxu0 %v1073_v8  ;;  %1487 = vmatpush1.msra.mxu1 %v1408_v10  ;;  %v1437_v8 = vld [vmem:[%s4456_s3 + $0xb08] sm:$0xff]  ;;  %v1434_v10 = vld [vmem:[%s4456_s3 + $0xaf0] sm:$0xff] }
 0x179   :  { %1303 = vmatprep.subr.mxu0 %v1068_v46  ;;  %1488 = vmatprep.subr.mxu1 %v1403_v20  ;;  %v1431_v46 = vld [vmem:[%s4456_s3 + $0xad8] sm:$0xff]  ;;  %v1428_v20 = vld [vmem:[%s4456_s3 + $0xac0] sm:$0xff] }
 0x17a   :  { %1304 = vmatpush1.msra.mxu0 %v1067_v49  ;;  %1489 = vmatpush1.msra.mxu1 %v1402_v50  ;;  %v1423_v49 = vld [vmem:[%s4456_s3 + $0xa98] sm:$0xff]  ;;  %v1425_v50 = vld [vmem:[%s4456_s3 + $0xaa8] sm:$0xff] }
 0x17b   :  { %1305 = vmatprep.subr.mxu0 %v1062_v39  ;;  %1490 = vmatprep.subr.mxu1 %v1397_v51  ;;  %v1422_v39 = vld [vmem:[%s4456_s3 + $0xa90] sm:$0xff]  ;;  %v1424_v51 = vld [vmem:[%s4456_s3 + $0xaa0] sm:$0xff] }
 0x17c   :  { %1306 = vmatpush1.msra.mxu0 %v1061_v52  ;;  %1491 = vmatpush1.msra.mxu1 %v1396_v53  ;;  %v1417_v52 = vld [vmem:[%s4456_s3 + $0xa68] sm:$0xff]  ;;  %v1419_v53 = vld [vmem:[%s4456_s3 + $0xa78] sm:$0xff] }
 0x17d   :  { %1307 = vmatprep.subr.mxu0 %v1056_v58  ;;  %1492 = vmatprep.subr.mxu1 %v1391_v16  ;;  %v1410_v58 = vld [vmem:[%s4456_s3 + $0xa30] sm:$0xff]  ;;  %v1412_v16 = vld [vmem:[%s4456_s3 + $0xa40] sm:$0xff] }
 0x17e   :  { %1308 = vmatpush1.msra.mxu0 %v1055_v60  ;;  %1493 = vmatpush1.msra.mxu1 %v1390_v61  ;;  %v1407_v60 = vld [vmem:[%s4456_s3 + $0xa18] sm:$0xff]  ;;  %v1404_v61 = vld [vmem:[%s4456_s3 + $0xa00] sm:$0xff] }
 0x17f   :  { %1309 = vmatprep.subr.mxu0 %v1050_v62  ;;  %1494 = vmatprep.subr.mxu1 %v1385_v63  ;;  %v1406_v62 = vld [vmem:[%s4456_s3 + $0xa10] sm:$0xff]  ;;  %v1399_v63 = vld [vmem:[%s4456_s3 + $0x9d8] sm:$0xff] }
 0x180   :  { %1310 = vmatpush1.msra.mxu0 %v1049_v1  ;;  %1495 = vmatpush1.msra.mxu1 %v1384_v12  ;;  %v1398_v1 = vld [vmem:[%s4456_s3 + $0x9d0] sm:$0xff]  ;;  %v1400_v12 = vld [vmem:[%s4456_s3 + $0x9e0] sm:$0xff] }
 0x181   :  { %1311 = vmatprep.subr.mxu0 %v1044_v15  ;;  %1496 = vmatprep.subr.mxu1 %v1379_v17  ;;  %v1392_v15 = vld [vmem:[%s4456_s3 + $0x9a0] sm:$0xff]  ;;  %v1394_v17 = vld [vmem:[%s4456_s3 + $0x9b0] sm:$0xff] }
 0x182   :  { %1312 = vmatpush1.msra.mxu0 %v1043_v18  ;;  %1497 = vmatpush1.msra.mxu1 %v1378_v19  ;;  %v1387_v18 = vld [vmem:[%s4456_s3 + $0x978] sm:$0xff]  ;;  %v1389_v19 = vld [vmem:[%s4456_s3 + $0x988] sm:$0xff] }
 0x183   :  { %1313 = vmatprep.subr.mxu0 %v1038_v23  ;;  %1498 = vmatprep.subr.mxu1 %v1373_v24  ;;  %v1381_v23 = vld [vmem:[%s4456_s3 + $0x948] sm:$0xff]  ;;  %v1383_v24 = vld [vmem:[%s4456_s3 + $0x958] sm:$0xff] }
 0x184   :  { %1314 = vmatpush1.msra.mxu0 %v1037_v25  ;;  %1347 = vmatprep.mubr.f32.mxu0 %v2363_v2  ;;  %v1380_v25 = vld [vmem:[%s4456_s3 + $0x940] sm:$0xff] }
 0x185   :  { %1499 = vmatpush1.msra.mxu1 %v1372_v5  ;;  %1532 = vmatprep.mubr.f32.mxu1 %v2363_v2  ;;  %v1382_v5 = vld [vmem:[%s4456_s3 + $0x950] sm:$0xff] }
 0x186   :  { %1348 = vmatmul.mubr.f32.vlgmr.msra.gmra.mxu0 %v3524_v47  ;;  %1533 = vmatmul.mubr.f32.vlgmr.msra.gmra.mxu1 %v3731_v3  ;;  %v1458_v47 = vld [vmem:[%s4456_s3 + $0xbb0] sm:$0xff] }
 0x187   :  { %1545 = vmatprep.subr.mxu0 %v1465_v27  ;;  %1622 = vmatprep.subr.mxu1 %v1467_v28  ;;  %v1377_v27 = vld [vmem:[%s4456_s3 + $0x928] sm:$0xff]  ;;  %v1374_v28 = vld [vmem:[%s4456_s3 + $0x910] sm:$0xff] }
 0x188   :  { %1546 = vmatpush1.msra.mxu0 %v1464_v29  ;;  %1623 = vmatpush1.msra.mxu1 %v1466_v30  ;;  %v1376_v29 = vld [vmem:[%s4456_s3 + $0x920] sm:$0xff]  ;;  %v1798_v30 = vld [vmem:[%s4458_s5 + $0xf8] sm:$0xff] }
 0x189   :  { %1547 = vmatprep.subr.mxu0 %v1459_v31  ;;  %1624 = vmatprep.subr.mxu1 %v1461_v32  ;;  %v1782_v31 = vld [vmem:[%s4458_s5 + $0x78] sm:$0xff]  ;;  %v1797_v32 = vld [vmem:[%s4458_s5 + $0xf0] sm:$0xff] }
 0x18a   :  { %1353 = vmatprep.mubr.f32.mxu0 %v2363_v2  ;;  %1538 = vmatprep.mubr.f32.mxu1 %v2363_v2 }
 0x18b   :  { %1548 = vmatpush1.msra.mxu0 %v1458_v47  ;;  %1625 = vmatpush1.msra.mxu1 %v1460_v34  ;;  %v1780_v47 = vld [vmem:[%s4458_s5 + $0x68] sm:$0xff]  ;;  %v1795_v34 = vld [vmem:[%s4458_s5 + $0xe0] sm:$0xff] }
 0x18c   :  { %1354 = vmatmul.mubr.f32.gmra.mxu0 %v3551_v11  ;;  %1539 = vmatmul.mubr.f32.gmra.mxu1 %v3758_v33  ;;  %v1448_v11 = vld [vmem:[%s4456_s3 + $0xb60] sm:$0xff] }
 0x18d   :  { %1549 = vmatprep.subr.mxu0 %v1453_v35  ;;  %1626 = vmatprep.subr.mxu1 %v1455_v4  ;;  %v1794_v35 = vld [vmem:[%s4458_s5 + $0xd8] sm:$0xff] }
 0x18e   :  { %1550 = vmatpush1.msra.mxu0 %v1452_v6  ;;  %1627 = vmatpush1.msra.mxu1 %v1454_v7  ;;  %v1778_v4 = vld [vmem:[%s4458_s5 + $0x58] sm:$0xff]  ;;  %v1793_v6 = vld [vmem:[%s4458_s5 + $0xd0] sm:$0xff] }
 0x18f   :  { %1551 = vmatprep.subr.mxu0 %v1447_v9  ;;  %1628 = vmatprep.subr.mxu1 %v1449_v36  ;;  %v1777_v7 = vld [vmem:[%s4458_s5 + $0x50] sm:$0xff]  ;;  %v1792_v9 = vld [vmem:[%s4458_s5 + $0xc8] sm:$0xff] }
 0x190   :  { %1552 = vmatpush1.msra.mxu0 %v1446_v37  ;;  %1629 = vmatpush1.msra.mxu1 %v1448_v11  ;;  %v1776_v36 = vld [vmem:[%s4458_s5 + $0x48] sm:$0xff]  ;;  %v1791_v37 = vld [vmem:[%s4458_s5 + $0xc0] sm:$0xff] }
 0x191   :  { %1553 = vmatprep.subr.mxu0 %v1441_v38  ;;  %1630 = vmatprep.subr.mxu1 %v1443_v40  ;;  %v1775_v11 = vld [vmem:[%s4458_s5 + $0x40] sm:$0xff]  ;;  %v1790_v38 = vld [vmem:[%s4458_s5 + $0xb8] sm:$0xff] }
 0x192   :  { %1554 = vmatpush1.msra.mxu0 %v1440_v41  ;;  %1631 = vmatpush1.msra.mxu1 %v1442_v42  ;;  %v1774_v40 = vld [vmem:[%s4458_s5 + $0x38] sm:$0xff]  ;;  %v1789_v41 = vld [vmem:[%s4458_s5 + $0xb0] sm:$0xff] }
 0x193   :  { %1555 = vmatprep.subr.mxu0 %v1435_v43  ;;  %1632 = vmatprep.subr.mxu1 %v1437_v8  ;;  %v1773_v42 = vld [vmem:[%s4458_s5 + $0x30] sm:$0xff]  ;;  %v1788_v43 = vld [vmem:[%s4458_s5 + $0xa8] sm:$0xff] }
 0x194   :  { %1556 = vmatpush1.msra.mxu0 %v1434_v10  ;;  %1633 = vmatpush1.msra.mxu1 %v1436_v44  ;;  %v1772_v8 = vld [vmem:[%s4458_s5 + $0x28] sm:$0xff]  ;;  %v1787_v10 = vld [vmem:[%s4458_s5 + $0xa0] sm:$0xff] }
 0x195   :  { %1557 = vmatprep.subr.mxu0 %v1429_v45  ;;  %1634 = vmatprep.subr.mxu1 %v1431_v46  ;;  %v1771_v44 = vld [vmem:[%s4458_s5 + $0x20] sm:$0xff]  ;;  %v1786_v45 = vld [vmem:[%s4458_s5 + $0x98] sm:$0xff] }
 0x196   :  { %1558 = vmatpush1.msra.mxu0 %v1428_v20  ;;  %1635 = vmatpush1.msra.mxu1 %v1430_v48  ;;  %v1770_v46 = vld [vmem:[%s4458_s5 + $0x18] sm:$0xff]  ;;  %v1785_v20 = vld [vmem:[%s4458_s5 + $0x90] sm:$0xff] }
 0x197   :  { %1559 = vmatprep.subr.mxu0 %v1423_v49  ;;  %1636 = vmatprep.subr.mxu1 %v1425_v50  ;;  %v1769_v48 = vld [vmem:[%s4458_s5 + $0x10] sm:$0xff]  ;;  %v1784_v49 = vld [vmem:[%s4458_s5 + $0x88] sm:$0xff] }
 0x198   :  { %1560 = vmatpush1.msra.mxu0 %v1422_v39  ;;  %1637 = vmatpush1.msra.mxu1 %v1424_v51  ;;  %v1768_v50 = vld [vmem:[%s4458_s5 + $0x8] sm:$0xff]  ;;  %v1783_v39 = vld [vmem:[%s4458_s5 + $0x80] sm:$0xff] }
 0x199   :  { %1561 = vmatprep.subr.mxu0 %v1417_v52  ;;  %1638 = vmatprep.subr.mxu1 %v1419_v53  ;;  %v1767_v51 = vld [vmem:[%s4458_s5] sm:$0xff]  ;;  %v1830_v52 = vld [vmem:[%s4458_s5 + $0x1f8] sm:$0xff] }
 0x19a   :  { %1562 = vmatpush1.msra.mxu0 %v1416_v54  ;;  %1639 = vmatpush1.msra.mxu1 %v1418_v55  ;;  %v1814_v53 = vld [vmem:[%s4458_s5 + $0x178] sm:$0xff]  ;;  %v1829_v55 = vld [vmem:[%s4458_s5 + $0x1f0] sm:$0xff] }
 0x19b   :  { %1563 = vmatprep.subr.mxu0 %v1411_v56  ;;  %1640 = vmatprep.subr.mxu1 %v1413_v57  ;;  %v4051_v54 = vld [vmem:[%s4458_s5 + $0x2f8] sm:$0xff]  ;;  %v1813_v56 = vld [vmem:[%s4458_s5 + $0x170] sm:$0xff]  ;;  %v1828_v57 = vld [vmem:[%s4458_s5 + $0x1e8] sm:$0xff] }
 0x19c   :  { %1564 = vmatpush1.msra.mxu0 %v1410_v58  ;;  %1641 = vmatpush1.msra.mxu1 %v1412_v16  ;;  %v1812_v58 = vld [vmem:[%s4458_s5 + $0x168] sm:$0xff]  ;;  %v1827_v16 = vld [vmem:[%s4458_s5 + $0x1e0] sm:$0xff] }
 0x19d   :  { %1565 = vmatprep.subr.mxu0 %v1405_v59  ;;  %1642 = vmatprep.subr.mxu1 %v1407_v60  ;;  %v1811_v59 = vld [vmem:[%s4458_s5 + $0x160] sm:$0xff]  ;;  %v1826_v60 = vld [vmem:[%s4458_s5 + $0x1d8] sm:$0xff] }
 0x19e   :  { %1566 = vmatpush1.msra.mxu0 %v1404_v61  ;;  %1643 = vmatpush1.msra.mxu1 %v1406_v62  ;;  %v1810_v61 = vld [vmem:[%s4458_s5 + $0x158] sm:$0xff]  ;;  %v1825_v62 = vld [vmem:[%s4458_s5 + $0x1d0] sm:$0xff] }
 0x19f   :  { %1567 = vmatprep.subr.mxu0 %v1399_v63  ;;  %1644 = vmatprep.subr.mxu1 %v1401_v0  ;;  %v1809_v63 = vld [vmem:[%s4458_s5 + $0x150] sm:$0xff]  ;;  %v1824_v0 = vld [vmem:[%s4458_s5 + $0x1c8] sm:$0xff] }
 0x1a0   :  { %1568 = vmatpush1.msra.mxu0 %v1398_v1  ;;  %1645 = vmatpush1.msra.mxu1 %v1400_v12  ;;  %v1808_v1 = vld [vmem:[%s4458_s5 + $0x148] sm:$0xff]  ;;  %v1823_v12 = vld [vmem:[%s4458_s5 + $0x1c0] sm:$0xff] }
 0x1a1   :  { %1569 = vmatprep.subr.mxu0 %v1393_v13  ;;  %1646 = vmatprep.subr.mxu1 %v1395_v14  ;;  %v1807_v13 = vld [vmem:[%s4458_s5 + $0x140] sm:$0xff]  ;;  %v1822_v14 = vld [vmem:[%s4458_s5 + $0x1b8] sm:$0xff] }
 0x1a2   :  { %1570 = vmatpush1.msra.mxu0 %v1392_v15  ;;  %1647 = vmatpush1.msra.mxu1 %v1394_v17  ;;  %v1806_v15 = vld [vmem:[%s4458_s5 + $0x138] sm:$0xff]  ;;  %v1821_v17 = vld [vmem:[%s4458_s5 + $0x1b0] sm:$0xff] }
 0x1a3   :  { %1571 = vmatprep.subr.mxu0 %v1387_v18  ;;  %1648 = vmatprep.subr.mxu1 %v1389_v19  ;;  %v1805_v18 = vld [vmem:[%s4458_s5 + $0x130] sm:$0xff] }
 0x1a4   :  { %1572 = vmatpush1.msra.mxu0 %v1386_v21  ;;  %1649 = vmatpush1.msra.mxu1 %v1388_v22  ;;  %v1820_v21 = vld [vmem:[%s4458_s5 + $0x1a8] sm:$0xff] }
 0x1a5   :  { %1573 = vmatprep.subr.mxu0 %v1381_v23  ;;  %1650 = vmatprep.subr.mxu1 %v1383_v24  ;;  %v1804_v22 = vld [vmem:[%s4458_s5 + $0x128] sm:$0xff]  ;;  %v1819_v23 = vld [vmem:[%s4458_s5 + $0x1a0] sm:$0xff] }
 0x1a6   :  { %1574 = vmatpush1.msra.mxu0 %v1380_v25  ;;  %1651 = vmatpush1.msra.mxu1 %v1382_v5  ;;  %v1803_v25 = vld [vmem:[%s4458_s5 + $0x120] sm:$0xff] }
 0x1a7   :  { %1575 = vmatprep.subr.mxu0 %v1375_v26  ;;  %1652 = vmatprep.subr.mxu1 %v1377_v27  ;;  %v1818_v26 = vld [vmem:[%s4458_s5 + $0x198] sm:$0xff] }
 0x1a8   :  { %1576 = vmatpush1.msra.mxu0 %v1374_v28  ;;  %1609 = vmatprep.mubr.f32.mxu0 %v2363_v2  ;;  %v1802_v27 = vld [vmem:[%s4458_s5 + $0x118] sm:$0xff]  ;;  %v1817_v28 = vld [vmem:[%s4458_s5 + $0x190] sm:$0xff] }
 0x1a9   :  { %1653 = vmatpush1.msra.mxu1 %v1376_v29  ;;  %1686 = vmatprep.mubr.f32.mxu1 %v2363_v2 }
 0x1aa   :  { %1610 = vmatmul.mubr.f32.vlgmr.msra.gmra.mxu0 %v3731_v3  ;;  %1687 = vmatmul.mubr.f32.vlgmr.msra.gmra.mxu1 %v3731_v3  ;;  %v1796_v3 = vld [vmem:[%s4458_s5 + $0xe8] sm:$0xff] }
 0x1ab   :  { %1615 = vmatprep.mubr.f32.mxu0 %v2363_v2  ;;  %1692 = vmatprep.mubr.f32.mxu1 %v2363_v2  ;;  %v1781_v2 = vld [vmem:[%s4458_s5 + $0x70] sm:$0xff] }
 0x1ac   :  { %2215 = vmatprep.subr.mxu0 %v1798_v30  ;;  %2253 = vmatprep.subr.mxu1 %v1830_v52  ;;  %v1801_v30 = vld [vmem:[%s4458_s5 + $0x110] sm:$0xff] }
 0x1ad   :  { %2216 = vmatpush3.msra.mxu0 %v1782_v31  ;;  %2254 = vmatpush3.msra.mxu1 %v1814_v53  ;;  %v1816_v31 = vld [vmem:[%s4458_s5 + $0x188] sm:$0xff] }
 0x1ae   :  { %1616 = vmatmul.mubr.f32.gmra.mxu0 %v3758_v33  ;;  %1693 = vmatmul.mubr.f32.gmra.mxu1 %v3758_v33  ;;  %v1779_v33 = vld [vmem:[%s4458_s5 + $0x60] sm:$0xff] }
 0x1af   :  { %2217 = vmatprep.subr.mxu0 %v1797_v32  ;;  %2255 = vmatprep.subr.mxu1 %v1829_v55  ;;  %v4187_v55 = vld [vmem:[%s4459_s4] sm:$0x3f] }
 0x1b0   :  { %2218 = vmatpush3.msra.mxu0 %v1781_v2  ;;  %2256 = vmatpush3.msra.mxu1 %v1813_v56 }
 0x1b1   :  { %2219 = vmatprep.subr.mxu0 %v1796_v3  ;;  %2257 = vmatprep.subr.mxu1 %v1828_v57  ;;  %v1800_v3 = vld [vmem:[%s4458_s5 + $0x108] sm:$0xff] }
 0x1b2   :  { %2220 = vmatpush3.msra.mxu0 %v1780_v47  ;;  %2258 = vmatpush3.msra.mxu1 %v1812_v58  ;;  %v1815_v47 = vld [vmem:[%s4458_s5 + $0x180] sm:$0xff] }
 0x1b3   :  { %2221 = vmatprep.subr.mxu0 %v1795_v34  ;;  %2259 = vmatprep.subr.mxu1 %v1827_v16  ;;  %v1799_v34 = vld [vmem:[%s4458_s5 + $0x100] sm:$0xff] }
 0x1b4   :  { %2222 = vmatpush3.msra.mxu0 %v1779_v33  ;;  %2260 = vmatpush3.msra.mxu1 %v1811_v59 }
 0x1b5   :  { %2223 = vmatprep.subr.mxu0 %v1794_v35  ;;  %2261 = vmatprep.subr.mxu1 %v1826_v60 }
 0x1b6   :  { %2224 = vmatpush3.msra.mxu0 %v1778_v4  ;;  %2262 = vmatpush3.msra.mxu1 %v1810_v61 }
 0x1b7   :  { %2225 = vmatprep.subr.mxu0 %v1793_v6  ;;  %2263 = vmatprep.subr.mxu1 %v1825_v62  ;;  %v4108_v19 = vpop.f32.mrf.mxu1  ;;  %v637_v32 = vpop.f32.mrf.mxu0 }
 0x1b8   :  { %2226 = vmatpush3.msra.mxu0 %v1777_v7  ;;  %2264 = vmatpush3.msra.mxu1 %v1809_v63 }
 0x1b9   :  { %2227 = vmatprep.subr.mxu0 %v1792_v9  ;;  %2265 = vmatprep.subr.mxu1 %v1824_v0  ;;  %v4119_v24 = vpop.f32.mrf.mxu1  ;;  %v639_v33 = vpop.f32.mrf.mxu0 }
 0x1ba   :  { %2228 = vmatpush3.msra.mxu0 %v1776_v36  ;;  %2266 = vmatpush3.msra.mxu1 %v1808_v1 }
 0x1bb   :  { %2229 = vmatprep.subr.mxu0 %v1791_v37  ;;  %2267 = vmatprep.subr.mxu1 %v1823_v12 }
 0x1bc   :  { %2230 = vmatpush3.msra.mxu0 %v1775_v11  ;;  %2268 = vmatpush3.msra.mxu1 %v1807_v13 }
 0x1bd   :  { %2231 = vmatprep.subr.mxu0 %v1790_v38  ;;  %2269 = vmatprep.subr.mxu1 %v1822_v14 }
 0x1be   :  { %2232 = vmatpush3.msra.mxu0 %v1774_v40  ;;  %2270 = vmatpush3.msra.mxu1 %v1806_v15 }
 0x1bf   :  { %2233 = vmatprep.subr.mxu0 %v1789_v41  ;;  %2271 = vmatprep.subr.mxu1 %v1821_v17 }
 0x1c0   :  { %2234 = vmatpush3.msra.mxu0 %v1773_v42  ;;  %2272 = vmatpush3.msra.mxu1 %v1805_v18 }
 0x1c1   :  { %2235 = vmatprep.subr.mxu0 %v1788_v43  ;;  %2273 = vmatprep.subr.mxu1 %v1820_v21 }
 0x1c2   :  { %2236 = vmatpush3.msra.mxu0 %v1772_v8  ;;  %2274 = vmatpush3.msra.mxu1 %v1804_v22 }
 0x1c3   :  { %2237 = vmatprep.subr.mxu0 %v1787_v10  ;;  %2275 = vmatprep.subr.mxu1 %v1819_v23 }
 0x1c4   :  { %2238 = vmatpush3.msra.mxu0 %v1771_v44  ;;  %2276 = vmatpush3.msra.mxu1 %v1803_v25 }
 0x1c5   :  { %2239 = vmatprep.subr.mxu0 %v1786_v45  ;;  %2277 = vmatprep.subr.mxu1 %v1818_v26 }
 0x1c6   :  { %2240 = vmatpush3.msra.mxu0 %v1770_v46  ;;  %2278 = vmatpush3.msra.mxu1 %v1802_v27 }
 0x1c7   :  { %2241 = vmatprep.subr.mxu0 %v1785_v20  ;;  %2279 = vmatprep.subr.mxu1 %v1817_v28  ;;  %v1713_v20 = vlaneseq }
 0x1c8   :  { %2242 = vmatpush3.msra.mxu0 %v1769_v48  ;;  %2280 = vmatpush3.msra.mxu1 %v1801_v30  ;;  %v4197_v30 = vld [vmem:[%s4458_s5 + $0x278] sm:$0xff] }
 0x1c9   :  { %2243 = vmatprep.subr.mxu0 %v1784_v49  ;;  %2281 = vmatprep.subr.mxu1 %v1816_v31 }
 0x1ca   :  { %2244 = vmatpush3.msra.mxu0 %v1768_v50  ;;  %2282 = vmatpush3.msra.mxu1 %v1800_v3  ;;  %v4207_v3 = vld [vmem:[%s4458_s5 + $0x270] sm:$0xff] }
 0x1cb   :  { %2245 = vmatprep.subr.mxu0 %v1783_v39  ;;  %2283 = vmatprep.subr.mxu1 %v1815_v47  ;;  %v4179_v39 = vshrl.u32 %v1713_v20, 7  ;;  %v4255_v20 = vld [vmem:[%s4458_s5 + $0x250] sm:$0xff] }
 0x1cc   :  { %2246 = vmatpush3.msra.mxu0 %v1767_v51  ;;  %2284 = vmatpush3.msra.mxu1 %v1799_v34  ;;  %v4213_v34 = vld [vmem:[%s4458_s5 + $0x2e8] sm:$0xff] }
 0x1cd   :  { %2291 = vmatprep.subr.mxu0 %v4051_v54  ;;  %2329 = vmatprep.subr.mxu1 %v4051_v54  ;;  %v1715_v53 = vsub.s32 0, %v4179_v39  ;;  %v1719_v56 = vsub.s32 1, %v4179_v39 }
 0x1cf   :  { %v1716_v61 = vrot.slane %v4187_v55, %v1715_v53  ;;  %v1720_v0 = vrot.slane %v4187_v55, %v1719_v56  ;;  %v4273_v53 = vld [vmem:[%s4458_s5 + $0x2c0] sm:$0xff] }
 0x1d0   :  { %v4279_v56 = vld [vmem:[%s4458_s5 + $0x240] sm:$0xff] }
 0x1d1   :  { %v4124_v5 = vpop.f32.mrf.mxu1  ;;  %v643_v4 = vpop.f32.mrf.mxu0 }
 0x1d3   :  { %v4135_v29 = vpop.f32.mrf.mxu1  ;;  %v645_v7 = vpop.f32.mrf.mxu0 }
 0x1da   :  { %v868_v2 = vpop.f32.mrf.mxu1  ;;  %v4153_v9 = vpop.f32.mrf.mxu0 }
 0x1db   :  { %v869_v54 = vadd.f32 %v868_v2, %v637_v32  ;;  %v4202_v32 = vld [vmem:[%s4458_s5 + $0x2f0] sm:$0xff] }
 0x1dc   :  { %v870_v35 = vpop.f32.mrf.mxu1  ;;  %v4157_v11 = vpop.f32.mrf.mxu0 }
 0x1dd   :  { %v871_v58 = vadd.f32 %v870_v35, %v639_v33  ;;  %v4219_v33 = vld [vmem:[%s4458_s5 + $0x268] sm:$0xff] }
 0x1e0   :  { %v874_v6 = vpop.f32.mrf.mxu1  ;;  %v797_v40 = vpop.f32.mrf.mxu0 }
 0x1e1   :  { %v875_v12 = vadd.f32 %v874_v6, %v643_v4  ;;  %v4225_v4 = vld [vmem:[%s4458_s5 + $0x2e0] sm:$0xff] }
 0x1e2   :  { %v876_v36 = vpop.f32.mrf.mxu1  ;;  %v4163_v43 = vpop.f32.mrf.mxu0 }
 0x1e3   :  { %v877_v17 = vadd.f32 %v876_v36, %v645_v7  ;;  %v4231_v7 = vld [vmem:[%s4458_s5 + $0x260] sm:$0xff]  ;;  %v4237_v36 = vld [vmem:[%s4458_s5 + $0x2d8] sm:$0xff] }
 0x1fe   :  { %v4155_v37 = vpop.f32.mrf.mxu1  ;;  %v4165_v8 = vpop.f32.mrf.mxu0 }
 0x200   :  { %v4159_v38 = vpop.f32.mrf.mxu1  ;;  %v4167_v10 = vpop.f32.mrf.mxu0 }
 0x204   :  { %v1028_v41 = vpop.f32.mrf.mxu1  ;;  %v4171_v45 = vpop.f32.mrf.mxu0 }
 0x205   :  { %v4161_v42 = vadd.f32 %v1028_v41, %v797_v40  ;;  %v4243_v40 = vld [vmem:[%s4458_s5 + $0x258] sm:$0xff]  ;;  %v4249_v41 = vld [vmem:[%s4458_s5 + $0x2d0] sm:$0xff] }
 0x206   :  { %v4169_v44 = vpop.f32.mrf.mxu1  ;;  %v4175_v48 = vpop.f32.mrf.mxu0 }
 0x222   :  { %v4173_v46 = vpop.f32.mrf.mxu1  ;;  %v1195_v50 = vpop.f32.mrf.mxu0 }
 0x223   :  { %v1360_v16 = vadd.f32 %v1195_v50, %v869_v54  ;;  %v4261_v50 = vld [vmem:[%s4458_s5 + $0x2c8] sm:$0xff] }
 0x224   :  { %v4177_v49 = vpop.f32.mrf.mxu1  ;;  %v1197_v52 = vpop.f32.mrf.mxu0 }
 0x225   :  { %v1361_v62 = vadd.f32 %v1197_v52, %v871_v58  ;;  %v4267_v52 = vld [vmem:[%s4458_s5 + $0x248] sm:$0xff]  ;;  %v4285_v58 = vld [vmem:[%s4458_s5 + $0x2b8] sm:$0xff] }
 0x228   :  { %v4181_v51 = vpop.f32.mrf.mxu1  ;;  %v1201_v59 = vpop.f32.mrf.mxu0 }
 0x229   :  { %v1366_v18 = vadd.f32 %v1201_v59, %v875_v12  ;;  %v4297_v59 = vld [vmem:[%s4458_s5 + $0x2b0] sm:$0xff]  ;;  %v4329_v12 = vld [vmem:[%s4458_s5 + $0x220] sm:$0xff] }
 0x22a   :  { %v4190_v57 = vpop.f32.mrf.mxu1  ;;  %v1203_v14 = vpop.f32.mrf.mxu0 }
 0x22b   :  { %v1367_v23 = vadd.f32 %v1203_v14, %v877_v17  ;;  %v1723_v14 = vsub.s32 2, %v4179_v39  ;;  %v1727_v17 = vsub.s32 3, %v4179_v39 }
 0x246   :  { %v1534_v60 = vpop.f32.mrf.mxu1  ;;  %v1349_v54 = vpop.f32.mrf.mxu0 }
 0x247   :  { %v1699_v63 = vadd.f32 %v1534_v60, %v1360_v16  ;;  %v4291_v16 = vld [vmem:[%s4458_s5 + $0x238] sm:$0xff] }
 0x248   :  { %v1536_v1 = vpop.f32.mrf.mxu1  ;;  %v1351_v60 = vpop.f32.mrf.mxu0 }
 0x249   :  { %v1700_v13 = vadd.f32 %v1536_v1, %v1361_v62  ;;  %v1743_v15 = vadd.f32 %v1716_v61, %v1699_v63  ;;  %v4309_v62 = vld [vmem:[%s4458_s5 + $0x2a8] sm:$0xff] }
 0x24a   :  { %v4315_v63 = vld [vmem:[%s4458_s5 + $0x228] sm:$0xff] }
 0x24b   :  { %v1744_v21 = vadd.f32 %v1720_v0, %v1700_v13  ;;  %v1755_v27 = vmax.f32 %v1743_v15, 0.0  ;;  %v4335_v13 = vld [vmem:[%s4458_s5 + $0x298] sm:$0xff]  ;;  %v1731_v15 = vsub.s32 4, %v4179_v39 }
 0x24c   :  { %v1540_v22 = vpop.f32.mrf.mxu1  ;;  %v4323_v1 = vpop.f32.mrf.mxu0 }
 0x24d   :  { %v1756_v25 = vmax.f32 %v1744_v21, 0.0  ;;  %v1705_v26 = vadd.f32 %v1540_v22, %v1366_v18  ;;  %v1735_v18 = vsub.s32 5, %v4179_v39  ;;  %v4345_v21 = vld [vmem:[%s4458_s5 + $0x218] sm:$0xff]  ;;  %v946_v22 = vadd.f32 %v4165_v8, %v4108_v19  ;;  %v4361_v39 = vld [vmem:[%s4458_s5 + $0x210] sm:$0xff] }
 0x24e   :  { %v1542_v28 = vpop.f32.mrf.mxu1  ;;  %v948_v19 = vadd.f32 %v4167_v10, %v4119_v24  ;;  %v1728_v24 = vrot.slane %v4187_v55, %v1727_v17  ;;  %v1031_v17 = vadd.f32 %v4169_v44, %v4163_v43 }
 0x24f   :  { %v1706_v31 = vadd.f32 %v1542_v28, %v1367_v23  ;;  %1934 = vmatprep.mubr.f32.mxu0 %v1756_v25  ;;  %v1749_v2 = vadd.f32 %v1716_v61, %v1705_v26  ;;  %v4303_v61 = vld [vmem:[%s4458_s5 + $0x230] sm:$0xff]  ;;  %v1023_v23 = vadd.f32 %v4155_v37, %v4153_v9  ;;  %v1357_v26 = vpop.f32.mrf.mxu0  ;;  %v1025_v9 = vadd.f32 %v4159_v38, %v4157_v11  ;;  %v4384_v38 = vld [vmem:[%s4458_s5 + $0x208] sm:$0xff] }
 0x250   :  { %1935 = vmatmul.mubr.f32.vlgmr.msra.gmra.mxu0 %v1755_v27  ;;  %v4355_v25 = vld [vmem:[%s4458_s5 + $0x290] sm:$0xff]  ;;  %v1362_v37 = vadd.f32 %v4173_v46, %v946_v22  ;;  %v4372_v27 = vld [vmem:[%s4458_s5 + $0x288] sm:$0xff]  ;;  %v1736_v11 = vrot.slane %v4187_v55, %v1735_v18  ;;  %v1363_v10 = vadd.f32 %v4177_v49, %v948_v19  ;;  %v4399_v49 = vld [vmem:[%s4458_s5 + $0x200] sm:$0xff] }
 0x251   :  { %v1750_v47 = vadd.f32 %v1720_v0, %v1706_v31  ;;  %2292 = vmatpush3.msra.mxu0 %v4197_v30  ;;  %v1761_v6 = vmax.f32 %v1749_v2, 0.0  ;;  %v4321_v0 = vld [vmem:[%s4458_s5 + $0x2a0] sm:$0xff]  ;;  %v1364_v8 = vadd.f32 %v1349_v54, %v1023_v23  ;;  %v1724_v31 = vrot.slane %v4187_v55, %v1723_v14 }
 0x252   :  { %2293 = vmatprep.subr.mxu0 %v4202_v32  ;;  %v1365_v46 = vadd.f32 %v1351_v60, %v1025_v9  ;;  %v4391_v54 = vld [vmem:[%s4458_s5 + $0x280] sm:$0xff]  ;;  %v954_v60 = vadd.f32 %v4175_v48, %v4135_v29 }
 0x253   :  { %v1762_v35 = vmax.f32 %v1750_v47, 0.0  ;;  %2294 = vmatpush3.msra.mxu0 %v4207_v3  ;;  %v4376_v47 = vrot.slane %v4187_v55, %v1731_v15  ;;  %v952_v55 = vadd.f32 %v4171_v45, %v4124_v5 }
 0x254   :  { %2295 = vmatprep.subr.mxu0 %v4213_v34 }
 0x255   :  { %1939 = vmatprep.mubr.f32.mxu0 %v1762_v35  ;;  %2296 = vmatpush3.msra.mxu0 %v4219_v33  ;;  %v1368_v5 = vadd.f32 %v4181_v51, %v952_v55 }
 0x256   :  { %1940 = vmatmul.mubr.f32.gmra.mxu0 %v1761_v6  ;;  %2297 = vmatprep.subr.mxu0 %v4225_v4 }
 0x257   :  { %2298 = vmatpush3.msra.mxu0 %v4231_v7 }
 0x258   :  { %2299 = vmatprep.subr.mxu0 %v4237_v36 }
 0x259   :  { %2300 = vmatpush3.msra.mxu0 %v4243_v40 }
 0x25a   :  { %2301 = vmatprep.subr.mxu0 %v4249_v41 }
 0x25b   :  { %2302 = vmatpush3.msra.mxu0 %v4255_v20 }
 0x25c   :  { %2303 = vmatprep.subr.mxu0 %v4261_v50 }
 0x25d   :  { %2304 = vmatpush3.msra.mxu0 %v4267_v52 }
 0x25e   :  { %2305 = vmatprep.subr.mxu0 %v4273_v53 }
 0x25f   :  { %2306 = vmatpush3.msra.mxu0 %v4279_v56 }
 0x260   :  { %2307 = vmatprep.subr.mxu0 %v4285_v58 }
 0x261   :  { %2308 = vmatpush3.msra.mxu0 %v4291_v16 }
 0x262   :  { %2309 = vmatprep.subr.mxu0 %v4297_v59 }
 0x263   :  { %2310 = vmatpush3.msra.mxu0 %v4303_v61 }
 0x264   :  { %2311 = vmatprep.subr.mxu0 %v4309_v62 }
 0x265   :  { %2312 = vmatpush3.msra.mxu0 %v4315_v63 }
 0x266   :  { %2313 = vmatprep.subr.mxu0 %v4321_v0 }
 0x267   :  { %2314 = vmatpush3.msra.mxu0 %v4329_v12 }
 0x268   :  { %2315 = vmatprep.subr.mxu0 %v4335_v13 }
 0x269   :  { %2316 = vmatpush3.msra.mxu0 %v4345_v21 }
 0x26a   :  { %v1611_v28 = vpop.f32.mrf.mxu0  ;;  %v1688_v2 = vpop.f32.mrf.mxu1  ;;  %2317 = vmatprep.subr.mxu0 %v4355_v25 }
 0x26b   :  { %v1701_v35 = vadd.f32 %v1611_v28, %v1362_v37  ;;  %v1703_v6 = vadd.f32 %v1688_v2, %v1364_v8  ;;  %2318 = vmatpush3.msra.mxu0 %v4361_v39  ;;  %v1369_v37 = vadd.f32 %v4190_v57, %v954_v60  ;;  %v1371_v8 = vadd.f32 %v1357_v26, %v1031_v17 }
 0x26c   :  { %v1613_v14 = vpop.f32.mrf.mxu0  ;;  %v1690_v15 = vpop.f32.mrf.mxu1  ;;  %2319 = vmatprep.subr.mxu0 %v4372_v27 }
 0x26d   :  { %v1702_v18 = vadd.f32 %v1613_v14, %v1363_v10  ;;  %v1704_v22 = vadd.f32 %v1690_v15, %v1365_v46  ;;  %2320 = vmatpush3.msra.mxu0 %v4384_v38  ;;  %v1745_v45 = vadd.f32 %v1724_v31, %v1701_v35  ;;  %v1747_v23 = vadd.f32 %v4376_v47, %v1703_v6 }
 0x26e   :  { %v1617_v19 = vpop.f32.mrf.mxu0  ;;  %v1694_v9 = vpop.f32.mrf.mxu1  ;;  %2321 = vmatprep.subr.mxu0 %v4391_v54 }
 0x26f   :  { %v1746_v29 = vadd.f32 %v1728_v24, %v1702_v18  ;;  %v1748_v48 = vadd.f32 %v1736_v11, %v1704_v22  ;;  %2322 = vmatpush3.msra.mxu0 %v4399_v49  ;;  %v1707_v43 = vadd.f32 %v1617_v19, %v1368_v5  ;;  %v1757_v35 = vmax.f32 %v1745_v45, 0.0 }
 0x270   :  { %v1619_v44 = vpop.f32.mrf.mxu0  ;;  %v1696_v28 = vpop.f32.mrf.mxu1  ;;  %v1759_v6 = vmax.f32 %v1747_v23, 0.0 }
 0x271   :  { %v1758_v2 = vmax.f32 %v1746_v29, 0.0  ;;  %v1760_v10 = vmax.f32 %v1748_v48, 0.0  ;;  %v1708_v51 = vadd.f32 %v1619_v44, %v1369_v37  ;;  %v1710_v46 = vadd.f32 %v1696_v28, %v1371_v8 }
 0x272   :  { %v1751_v55 = vadd.f32 %v1724_v31, %v1707_v43 }
 0x273   :  { %v1752_v14 = vadd.f32 %v1728_v24, %v1708_v51  ;;  %v1754_v15 = vadd.f32 %v1736_v11, %v1710_v46  ;;  %2009 = vmatprep.mubr.f32.mxu1 %v1758_v2  ;;  %2084 = vmatprep.mubr.f32.mxu0 %v1760_v10 }
 0x274   :  { %2010 = vmatmul.mubr.f32.vlgmr.msra.gmra.mxu1 %v1757_v35  ;;  %2085 = vmatmul.mubr.f32.vlgmr.msra.gmra.mxu0 %v1759_v6  ;;  %v1763_v26 = vmax.f32 %v1751_v55, 0.0 }
 0x275   :  { %v1764_v57 = vmax.f32 %v1752_v14, 0.0  ;;  %2345 = vmatpush3.msra.mxu1 %v4197_v30  ;;  %v1766_v60 = vmax.f32 %v1754_v15, 0.0  ;;  %v1370_v30 = vadd.f32 %v4323_v1, %v4161_v42 }
 0x276   :  { %2330 = vmatprep.subr.mxu1 %v4202_v32 }
 0x277   :  { %2346 = vmatpush3.msra.mxu1 %v4207_v3  ;;  %2014 = vmatprep.mubr.f32.mxu1 %v1764_v57  ;;  %v1709_v32 = vadd.f32 %v1694_v9, %v1370_v30 }
 0x278   :  { %2331 = vmatprep.subr.mxu1 %v4213_v34  ;;  %2015 = vmatmul.mubr.f32.gmra.mxu1 %v1763_v26 }
 0x279   :  { %2347 = vmatpush3.msra.mxu1 %v4219_v33  ;;  %2089 = vmatprep.mubr.f32.mxu1 %v1766_v60  ;;  %v1753_v3 = vadd.f32 %v4376_v47, %v1709_v32 }
 0x27a   :  { %2332 = vmatprep.subr.mxu1 %v4225_v4 }
 0x27b   :  { %2348 = vmatpush3.msra.mxu1 %v4231_v7  ;;  %v1765_v42 = vmax.f32 %v1753_v3, 0.0 }
 0x27c   :  { %2333 = vmatprep.subr.mxu1 %v4237_v36 }
 0x27d   :  { %2349 = vmatpush3.msra.mxu1 %v4243_v40  ;;  %v2102_v40 = vld [vmem:[%s4460_s6] ss:$0 sm:$0xff] }
 0x27e   :  { %2334 = vmatprep.subr.mxu1 %v4249_v41 }
 0x27f   :  { %2350 = vmatpush3.msra.mxu1 %v4255_v20 }
 0x280   :  { %2335 = vmatprep.subr.mxu1 %v4261_v50 }
 0x281   :  { %2351 = vmatpush3.msra.mxu1 %v4267_v52 }
 0x282   :  { %2336 = vmatprep.subr.mxu1 %v4273_v53 }
 0x283   :  { %2352 = vmatpush3.msra.mxu1 %v4279_v56 }
 0x284   :  { %2337 = vmatprep.subr.mxu1 %v4285_v58 }
 0x285   :  { %2353 = vmatpush3.msra.mxu1 %v4291_v16 }
 0x286   :  { %2338 = vmatprep.subr.mxu1 %v4297_v59 }
 0x287   :  { %2354 = vmatpush3.msra.mxu1 %v4303_v61 }
 0x288   :  { %2339 = vmatprep.subr.mxu1 %v4309_v62 }
 0x289   :  { %2355 = vmatpush3.msra.mxu1 %v4315_v63 }
 0x28a   :  { %2340 = vmatprep.subr.mxu1 %v4321_v0 }
 0x28b   :  { %2356 = vmatpush3.msra.mxu1 %v4329_v12 }
 0x28c   :  { %2341 = vmatprep.subr.mxu1 %v4335_v13 }
 0x28d   :  { %2357 = vmatpush3.msra.mxu1 %v4345_v21 }
 0x28e   :  { %2342 = vmatprep.subr.mxu1 %v4355_v25 }
 0x28f   :  { %2358 = vmatpush3.msra.mxu1 %v4361_v39 }
 0x290   :  { %2343 = vmatprep.subr.mxu1 %v4372_v27 }
 0x291   :  { %2359 = vmatpush3.msra.mxu1 %v4384_v38 }
 0x292   :  { %2344 = vmatprep.subr.mxu1 %v4391_v54 }
 0x293   :  { %2360 = vmatpush3.msra.mxu1 %v4399_v49 }
 0x294   :  { %2090 = vmatmul.mubr.f32.vlgmr.msra.gmra.mxu1 %v1765_v42 }
 0x310   :  { %v2247_v34 = vpop.f32.mrf.mxu0 }
 0x312   :  { %v2248_v33 = vpop.f32.mrf.mxu0 }
 0x313   :  { %v2249_v36 = vadd.f32 %v2248_v33, %v2247_v34 }
 0x315   :  { %v1937_v53 = vadd.f32 %v2249_v36, %v2102_v40 }
 0x316   :  { %v2250_v4 = vpop.f32.mrf.mxu0 }
 0x318   :  { %v2251_v7 = vpop.f32.mrf.mxu0 }
 0x319   :  { %v2252_v63 = vadd.f32 %v2251_v7, %v2250_v4 }
 0x31b   :  { %v1942_v12 = vadd.f32 %v2252_v63, %v2102_v40 }
 0x334   :  { %v2285_v41 = vpop.f32.mrf.mxu1  ;;  %v2323_v20 = vpop.f32.mrf.mxu0 }
 0x336   :  { %v2286_v50 = vpop.f32.mrf.mxu1  ;;  %v2324_v52 = vpop.f32.mrf.mxu0 }
 0x337   :  { %v2287_v56 = vadd.f32 %v2286_v50, %v2285_v41  ;;  %v2325_v16 = vadd.f32 %v2324_v52, %v2323_v20 }
 0x338   :  { %v2288_v61 = vpop.f32.mrf.mxu1 }
 0x339   :  { %v2012_v58 = vadd.f32 %v2287_v56, %v1937_v53 }
 0x33a   :  { %v2289_v62 = vpop.f32.mrf.mxu1 }
 0x33b   :  { %v2087_v59 = vadd.f32 %v2325_v16, %v2012_v58  ;;  %v2290_v0 = vadd.f32 %v2289_v62, %v2288_v61 }
 0x33d   :  { %2095 = vst [vmem:[%s4461_s7] sm:$0xff] %v2087_v59  ;;  %v2017_v21 = vadd.f32 %v2290_v0, %v1942_v12 }
 0x354   :  { %v2326_v1 = vpop.f32.mrf.mxu1 }
 0x356   :  { %v2327_v13 = vpop.f32.mrf.mxu1 }
 0x357   :  { %v2328_v25 = vadd.f32 %v2327_v13, %v2326_v1 }
 0x359   :  { %v2092_v39 = vadd.f32 %v2328_v25, %v2017_v21 }
 0x35b   :  { %2096 = vst [vmem:[%s4461_s7 + $0x8] sm:$0xff] %v2092_v39 }

</bundles_post_ra>
